<compile_context>
chip_gen: v5e
topology: v5e:2x2
jax: 0.10.0
libtpu: 0.0.40
codegen_flags: <defaults>
</compile_context>

<pallas_src>
import functools

import jax
import jax.numpy as jnp
from jax import lax
from jax.experimental import pallas as pl
from jax.experimental.pallas import tpu as pltpu

LRELU_SLOPE = 0.2
BN_EPS = 1e-5


# ------------------------------ fused Pallas kernel ------------------------- #

def _basic_block_fused_kernel(x_ref, w1_ref, b1_ref, w2_ref, b2_ref, o_ref,
                              *, H, W):
    """Fused BasicBlock_BN for one image, planes-major (C, H*W) layout.

    x_ref : (1, Cin,  H*W)   input image (compute dtype: bf16 or f32)
    w1_ref: (Cout, Cin)      BN-folded 1x1 conv weight (compute dtype)
    b1_ref: (Cout, 1)        BN-folded bias (f32)
    w2_ref: (Cout, 9*Cin)    BN-folded 3x3 conv weight, taps row-major (dy, dx)
    b2_ref: (Cout, 1)        BN-folded bias (f32)
    o_ref : (1, Cout, H*W)   output image (compute dtype)
    """
    HW = H * W
    Cout = w1_ref.shape[0]

    x = x_ref[0]                                                    # (Cin, HW)

    # ---- conv1 (1x1) + folded BN + LeakyReLU(0.2); f32 accumulation. ----
    y = jnp.dot(w1_ref[...], x, preferred_element_type=jnp.float32)  # (Cout, HW)
    y = y + b1_ref[...]
    y = jnp.where(y > 0, y, LRELU_SLOPE * y)

    # ---- reflect pad (1) on H and W — stays entirely on-chip. ----
    y3 = y.reshape(Cout, H, W)
    y3 = jnp.concatenate([y3[:, 1:2, :], y3, y3[:, H - 2:H - 1, :]], axis=1)
    y3 = jnp.concatenate([y3[:, :, 1:2], y3, y3[:, :, W - 2:W - 1]], axis=2)
    # y3: (Cout, H + 2, W + 2)

    # ---- im2col slab: one K = 9*Cin matmul instead of 9 K=Cin matmuls. ----
    cols = [y3[:, dy:dy + H, dx:dx + W].reshape(Cout, HW)
            for dy in range(3) for dx in range(3)]
    col = jnp.concatenate(cols, axis=0)                             # (9*Cin, HW)
    col = col.astype(w2_ref.dtype)                                  # bf16 MXU feed

    # ---- conv2 (3x3) + folded BN + LeakyReLU(0.2). ----
    z = jnp.dot(w2_ref[...], col, preferred_element_type=jnp.float32)
    z = z + b2_ref[...]
    z = jnp.where(z > 0, z, LRELU_SLOPE * z)

    # ---- residual add + final ReLU; lane-dense (Cout, HW) store. ----
    z = z + x.astype(jnp.float32)
    o_ref[0] = jnp.maximum(z, 0.0).astype(o_ref.dtype)


# ------------------------------- wrapper / glue ------------------------------ #

def _fold_bn_scale_bias(b, gamma, beta, mean, var, eps=BN_EPS):
    # y = BN(conv(x) + b) == conv'(x) + b'  with
    #   s = gamma / sqrt(var + eps);  w' = w * s;  b' = (b - mean) * s + beta
    s = gamma / jnp.sqrt(var + eps)
    return s, (b - mean) * s + beta


def basic_block_bn_forward(x_nchw, params, *, compute_dtype=jnp.bfloat16):
    """Forward pass of BasicBlock_BN (stride=1, first=False). Input/output NCHW."""
    N, C, H, W = x_nchw.shape

    # TODO(synk): BatchNorm is evaluated in inference mode (running stats);
    # PyTorch training-mode batch statistics are not reproduced.
    s1, b1 = _fold_bn_scale_bias(params["b1"], params["g1"], params["be1"],
                                 params["m1"], params["v1"])
    w1 = params["w1"][:, :, 0, 0] * s1[:, None]                     # (Cout, Cin)

    s2, b2 = _fold_bn_scale_bias(params["b2"], params["g2"], params["be2"],
                                 params["m2"], params["v2"])
    # OIHW -> (O, Kh, Kw, I) -> (O, 9*I), matching the im2col tap ordering.
    w2 = jnp.transpose(params["w2"], (0, 2, 3, 1)).reshape(C, 9 * C)
    w2 = w2 * s2[:, None]

    # bf16 (or f32) activations/weights; biases stay f32 (added to f32 acc).
    x = x_nchw.reshape(N, C, H * W).astype(compute_dtype)
    w1 = w1.astype(compute_dtype)
    w2 = w2.astype(compute_dtype)
    b1 = b1.astype(jnp.float32)[:, None]
    b2 = b2.astype(jnp.float32)[:, None]

    out = pl.pallas_call(
        functools.partial(_basic_block_fused_kernel, H=H, W=W),
        out_shape=jax.ShapeDtypeStruct((N, C, H * W), compute_dtype),
        grid=(N,),
        in_specs=[
            pl.BlockSpec((1, C, H * W), lambda n: (n, 0, 0)),
            pl.BlockSpec((C, C), lambda n: (0, 0)),
            pl.BlockSpec((C, 1), lambda n: (0, 0)),
            pl.BlockSpec((C, 9 * C), lambda n: (0, 0)),
            pl.BlockSpec((C, 1), lambda n: (0, 0)),
        ],
        out_specs=pl.BlockSpec((1, C, H * W), lambda n: (n, 0, 0)),
        compiler_params=pltpu.CompilerParams(
            dimension_semantics=("parallel",),
            vmem_limit_bytes=32 * 1024 * 1024,
        ),
    )(x, w1, b1, w2, b2)

    return out.reshape(N, C, H, W)


# ------------------------------ pure-JAX reference --------------------------- #

def _bn_eval(x_nchw, g, b, m, v):
    inv = g / jnp.sqrt(v + BN_EPS)
    return (x_nchw - m[None, :, None, None]) * inv[None, :, None, None] \
        + b[None, :, None, None]


def _lrelu(x):
    return jnp.where(x > 0, x, LRELU_SLOPE * x)


def _ref_forward(x, p):
    dn = ("NCHW", "OIHW", "NCHW")
    y = lax.conv_general_dilated(x, p["w1"], (1, 1), "VALID",
                                 dimension_numbers=dn)
    y = y + p["b1"][None, :, None, None]
    y = _lrelu(_bn_eval(y, p["g1"], p["be1"], p["m1"], p["v1"]))
    yp = jnp.pad(y, ((0, 0), (0, 0), (1, 1), (1, 1)), mode="reflect")
    y2 = lax.conv_general_dilated(yp, p["w2"], (1, 1), "VALID",
                                  dimension_numbers=dn)
    y2 = y2 + p["b2"][None, :, None, None]
    y2 = _lrelu(_bn_eval(y2, p["g2"], p["be2"], p["m2"], p["v2"]))
    return jnp.maximum(y2 + x, 0.0)


# ----------------------------------- main ------------------------------------ #

if __name__ == "__main__":
    N, C, H, W = 2, 4, 16, 16        # inplanes = planes = 4, stride=1, first=False
    key = jax.random.PRNGKey(0)
    ks = jax.random.split(key, 16)

    x = jax.random.normal(ks[0], (N, C, H, W), dtype=jnp.float32)

    params = {
        # conv1: 1x1, inplanes -> planes
        "w1": 0.3 * jax.random.normal(ks[1], (C, C, 1, 1), dtype=jnp.float32),
        "b1": 0.1 * jax.random.normal(ks[2], (C,), dtype=jnp.float32),
        "g1": 1.0 + 0.1 * jax.random.normal(ks[3], (C,), dtype=jnp.float32),
        "be1": 0.1 * jax.random.normal(ks[4], (C,), dtype=jnp.float32),
        "m1": 0.1 * jax.random.normal(ks[5], (C,), dtype=jnp.float32),
        "v1": 1.0 + 0.1 * jax.nn.softplus(
            jax.random.normal(ks[6], (C,), dtype=jnp.float32)),
        # conv2: 3x3, planes -> planes
        "w2": 0.3 * jax.random.normal(ks[7], (C, C, 3, 3), dtype=jnp.float32),
        "b2": 0.1 * jax.random.normal(ks[8], (C,), dtype=jnp.float32),
        "g2": 1.0 + 0.1 * jax.random.normal(ks[9], (C,), dtype=jnp.float32),
        "be2": 0.1 * jax.random.normal(ks[10], (C,), dtype=jnp.float32),
        "m2": 0.1 * jax.random.normal(ks[11], (C,), dtype=jnp.float32),
        "v2": 1.0 + 0.1 * jax.nn.softplus(
            jax.random.normal(ks[12], (C,), dtype=jnp.float32)),
    }

    fwd_f32 = jax.jit(functools.partial(basic_block_bn_forward,
                                        compute_dtype=jnp.float32))
    fwd_bf16 = jax.jit(functools.partial(basic_block_bn_forward,
                                         compute_dtype=jnp.bfloat16))

    out_f32 = jax.block_until_ready(fwd_f32(x, params))
    out_bf16 = jax.block_until_ready(fwd_bf16(x, params))

    ref = _ref_forward(x, params)
    if not bool(jnp.allclose(out_f32, ref, rtol=1e-4, atol=1e-4)):
        raise AssertionError("f32 Pallas BasicBlock_BN output mismatch vs reference")
    if not bool(jnp.allclose(out_bf16.astype(jnp.float32), ref,
                             rtol=5e-2, atol=5e-2)):
        raise AssertionError("bf16 Pallas BasicBlock_BN output mismatch vs reference")

    print("KERNEL_OK")
</pallas_src>

<mosaic_0001>
module attributes {stable_mosaic.version = 11 : i64} {
  func.func @_basic_block_fused_kernel(%arg0: i32, %arg1: memref<1x4x256xf32, #tpu.memory_space<vmem>>, %arg2: memref<4x4xf32, #tpu.memory_space<vmem>>, %arg3: memref<4x1xf32, #tpu.memory_space<vmem>>, %arg4: memref<4x36xf32, #tpu.memory_space<vmem>>, %arg5: memref<4x1xf32, #tpu.memory_space<vmem>>, %arg6: memref<1x4x256xf32, #tpu.memory_space<vmem>>) attributes {dimension_semantics = [#tpu.dimension_semantics<parallel>], iteration_bounds = array<i64: 2>, scalar_prefetch = 0 : i64, scratch_operands = 0 : i64, tpu.core_type = #tpu.core_type<tc>, window_params = [{transform_indices = @transform_0, window_bounds = array<i64: 1, 4, 256>}, {pipeline_mode = #tpu.pipeline_mode<synchronous>, transform_indices = @transform_1, window_bounds = array<i64: 4, 4>}, {pipeline_mode = #tpu.pipeline_mode<synchronous>, transform_indices = @transform_2, window_bounds = array<i64: 4, 1>}, {pipeline_mode = #tpu.pipeline_mode<synchronous>, transform_indices = @transform_3, window_bounds = array<i64: 4, 36>}, {pipeline_mode = #tpu.pipeline_mode<synchronous>, transform_indices = @transform_4, window_bounds = array<i64: 4, 1>}, {transform_indices = @transform_5, window_bounds = array<i64: 1, 4, 256>}]} {
    %c0 = arith.constant 0 : index
    %c0_0 = arith.constant 0 : index
    %c0_1 = arith.constant 0 : index
    %0 = vector.load %arg1[%c0, %c0_0, %c0_1] : memref<1x4x256xf32, #tpu.memory_space<vmem>>, vector<1x4x256xf32>
    %1 = vector.shape_cast %0 : vector<1x4x256xf32> to vector<4x256xf32>
    %c0_2 = arith.constant 0 : index
    %c0_3 = arith.constant 0 : index
    %2 = vector.load %arg2[%c0_2, %c0_3] : memref<4x4xf32, #tpu.memory_space<vmem>>, vector<4x4xf32>
    %cst = arith.constant dense<0.000000e+00> : vector<4x256xf32>
    %3 = tpu.matmul %2, %1, %cst {dimension_numbers = #tpu.dot_dimension_numbers<[1], [0], [0], [1], [0, 0, 1, 1], [], []>} : vector<4x4xf32>, vector<4x256xf32>, vector<4x256xf32> -> vector<4x256xf32>
    %c0_4 = arith.constant 0 : index
    %c0_5 = arith.constant 0 : index
    %4 = vector.load %arg3[%c0_4, %c0_5] : memref<4x1xf32, #tpu.memory_space<vmem>>, vector<4x1xf32>
    %5 = vector.broadcast %4 : vector<4x1xf32> to vector<4x256xf32>
    %6 = arith.addf %3, %5 : vector<4x256xf32>
    %cst_6 = arith.constant 0.000000e+00 : f32
    %7 = vector.broadcast %cst_6 : f32 to vector<4x256xf32>
    %8 = arith.cmpf ogt, %6, %7 : vector<4x256xf32>
    %cst_7 = arith.constant 2.000000e-01 : f32
    %9 = vector.broadcast %cst_7 : f32 to vector<4x256xf32>
    %10 = arith.mulf %9, %6 : vector<4x256xf32>
    %11 = arith.select %8, %6, %10 : vector<4x256xi1>, vector<4x256xf32>
    %12 = vector.shape_cast %11 : vector<4x256xf32> to vector<4x16x16xf32>
    %13 = vector.extract_strided_slice %12 {offsets = [0, 1, 0], sizes = [4, 1, 16], strides = [1, 1, 1]} : vector<4x16x16xf32> to vector<4x1x16xf32>
    %14 = vector.extract_strided_slice %12 {offsets = [0, 14, 0], sizes = [4, 1, 16], strides = [1, 1, 1]} : vector<4x16x16xf32> to vector<4x1x16xf32>
    %15 = tpu.concatenate %13, %12, %14 in 1 : vector<4x1x16xf32>, vector<4x16x16xf32>, vector<4x1x16xf32> -> vector<4x18x16xf32>
    %16 = vector.extract_strided_slice %15 {offsets = [0, 0, 1], sizes = [4, 18, 1], strides = [1, 1, 1]} : vector<4x18x16xf32> to vector<4x18x1xf32>
    %17 = vector.extract_strided_slice %15 {offsets = [0, 0, 14], sizes = [4, 18, 1], strides = [1, 1, 1]} : vector<4x18x16xf32> to vector<4x18x1xf32>
    %18 = tpu.concatenate %16, %15, %17 in 2 : vector<4x18x1xf32>, vector<4x18x16xf32>, vector<4x18x1xf32> -> vector<4x18x18xf32>
    %19 = vector.extract_strided_slice %18 {offsets = [0, 0, 0], sizes = [4, 16, 16], strides = [1, 1, 1]} : vector<4x18x18xf32> to vector<4x16x16xf32>
    %20 = vector.shape_cast %19 : vector<4x16x16xf32> to vector<4x256xf32>
    %21 = vector.extract_strided_slice %18 {offsets = [0, 0, 1], sizes = [4, 16, 16], strides = [1, 1, 1]} : vector<4x18x18xf32> to vector<4x16x16xf32>
    %22 = vector.shape_cast %21 : vector<4x16x16xf32> to vector<4x256xf32>
    %23 = vector.extract_strided_slice %18 {offsets = [0, 0, 2], sizes = [4, 16, 16], strides = [1, 1, 1]} : vector<4x18x18xf32> to vector<4x16x16xf32>
    %24 = vector.shape_cast %23 : vector<4x16x16xf32> to vector<4x256xf32>
    %25 = vector.extract_strided_slice %18 {offsets = [0, 1, 0], sizes = [4, 16, 16], strides = [1, 1, 1]} : vector<4x18x18xf32> to vector<4x16x16xf32>
    %26 = vector.shape_cast %25 : vector<4x16x16xf32> to vector<4x256xf32>
    %27 = vector.extract_strided_slice %18 {offsets = [0, 1, 1], sizes = [4, 16, 16], strides = [1, 1, 1]} : vector<4x18x18xf32> to vector<4x16x16xf32>
    %28 = vector.shape_cast %27 : vector<4x16x16xf32> to vector<4x256xf32>
    %29 = vector.extract_strided_slice %18 {offsets = [0, 1, 2], sizes = [4, 16, 16], strides = [1, 1, 1]} : vector<4x18x18xf32> to vector<4x16x16xf32>
    %30 = vector.shape_cast %29 : vector<4x16x16xf32> to vector<4x256xf32>
    %31 = vector.extract_strided_slice %18 {offsets = [0, 2, 0], sizes = [4, 16, 16], strides = [1, 1, 1]} : vector<4x18x18xf32> to vector<4x16x16xf32>
    %32 = vector.shape_cast %31 : vector<4x16x16xf32> to vector<4x256xf32>
    %33 = vector.extract_strided_slice %18 {offsets = [0, 2, 1], sizes = [4, 16, 16], strides = [1, 1, 1]} : vector<4x18x18xf32> to vector<4x16x16xf32>
    %34 = vector.shape_cast %33 : vector<4x16x16xf32> to vector<4x256xf32>
    %35 = vector.extract_strided_slice %18 {offsets = [0, 2, 2], sizes = [4, 16, 16], strides = [1, 1, 1]} : vector<4x18x18xf32> to vector<4x16x16xf32>
    %36 = vector.shape_cast %35 : vector<4x16x16xf32> to vector<4x256xf32>
    %37 = tpu.concatenate %20, %22, %24, %26, %28, %30, %32, %34, %36 in 0 : vector<4x256xf32>, vector<4x256xf32>, vector<4x256xf32>, vector<4x256xf32>, vector<4x256xf32>, vector<4x256xf32>, vector<4x256xf32>, vector<4x256xf32>, vector<4x256xf32> -> vector<36x256xf32>
    %c0_8 = arith.constant 0 : index
    %c0_9 = arith.constant 0 : index
    %38 = vector.load %arg4[%c0_8, %c0_9] : memref<4x36xf32, #tpu.memory_space<vmem>>, vector<4x36xf32>
    %cst_10 = arith.constant dense<0.000000e+00> : vector<4x256xf32>
    %39 = tpu.matmul %38, %37, %cst_10 {dimension_numbers = #tpu.dot_dimension_numbers<[1], [0], [0], [1], [0, 0, 1, 1], [], []>} : vector<4x36xf32>, vector<36x256xf32>, vector<4x256xf32> -> vector<4x256xf32>
    %c0_11 = arith.constant 0 : index
    %c0_12 = arith.constant 0 : index
    %40 = vector.load %arg5[%c0_11, %c0_12] : memref<4x1xf32, #tpu.memory_space<vmem>>, vector<4x1xf32>
    %41 = vector.broadcast %40 : vector<4x1xf32> to vector<4x256xf32>
    %42 = arith.addf %39, %41 : vector<4x256xf32>
    %cst_13 = arith.constant 0.000000e+00 : f32
    %43 = vector.broadcast %cst_13 : f32 to vector<4x256xf32>
    %44 = arith.cmpf ogt, %42, %43 : vector<4x256xf32>
    %cst_14 = arith.constant 2.000000e-01 : f32
    %45 = vector.broadcast %cst_14 : f32 to vector<4x256xf32>
    %46 = arith.mulf %45, %42 : vector<4x256xf32>
    %47 = arith.select %44, %42, %46 : vector<4x256xi1>, vector<4x256xf32>
    %48 = arith.addf %47, %1 : vector<4x256xf32>
    %cst_15 = arith.constant 0.000000e+00 : f32
    %49 = vector.broadcast %cst_15 : f32 to vector<4x256xf32>
    %50 = arith.maximumf %48, %49 : vector<4x256xf32>
    %c0_16 = arith.constant 0 : index
    %c0_17 = arith.constant 0 : index
    %c0_18 = arith.constant 0 : index
    %51 = vector.load %arg6[%c0_16, %c0_17, %c0_18] : memref<1x4x256xf32, #tpu.memory_space<vmem>>, vector<1x4x256xf32>
    %52 = vector.shape_cast %51 : vector<1x4x256xf32> to vector<4x256xf32>
    %53 = vector.shape_cast %50 : vector<4x256xf32> to vector<1x4x256xf32>
    tpu.vector_store %arg6[%c0_16, %c0_17, %c0_18], %53 {strides = array<i32>} : memref<1x4x256xf32, #tpu.memory_space<vmem>>, vector<1x4x256xf32>,
    return
  }
  func.func @transform_0(%arg0: i32) -> (i32, i32, i32) {
    %c0_i32 = arith.constant 0 : i32
    %c0_i32_0 = arith.constant 0 : i32
    %c0_i32_1 = arith.constant 0 : i32
    return %arg0, %c0_i32, %c0_i32_0 : i32, i32, i32
  }
  func.func @transform_1(%arg0: i32) -> (i32, i32) {
    %c0_i32 = arith.constant 0 : i32
    %c0_i32_0 = arith.constant 0 : i32
    %c0_i32_1 = arith.constant 0 : i32
    return %c0_i32, %c0_i32_0 : i32, i32
  }
  func.func @transform_2(%arg0: i32) -> (i32, i32) {
    %c0_i32 = arith.constant 0 : i32
    %c0_i32_0 = arith.constant 0 : i32
    %c0_i32_1 = arith.constant 0 : i32
    return %c0_i32, %c0_i32_0 : i32, i32
  }
  func.func @transform_3(%arg0: i32) -> (i32, i32) {
    %c0_i32 = arith.constant 0 : i32
    %c0_i32_0 = arith.constant 0 : i32
    %c0_i32_1 = arith.constant 0 : i32
    return %c0_i32, %c0_i32_0 : i32, i32
  }
  func.func @transform_4(%arg0: i32) -> (i32, i32) {
    %c0_i32 = arith.constant 0 : i32
    %c0_i32_0 = arith.constant 0 : i32
    %c0_i32_1 = arith.constant 0 : i32
    return %c0_i32, %c0_i32_0 : i32, i32
  }
  func.func @transform_5(%arg0: i32) -> (i32, i32, i32) {
    %c0_i32 = arith.constant 0 : i32
    %c0_i32_0 = arith.constant 0 : i32
    %c0_i32_1 = arith.constant 0 : i32
    return %arg0, %c0_i32, %c0_i32_0 : i32, i32, i32
  }
}

</mosaic_0001>

<bundles_post_ra>
// kernel: basic_block_bn_forward.1
= control target key start
LH: loop header
LB: loop body
LE: loop exit
PB: predicated region body
PF: predicated region fallthrough
CT: control target
= control target key end

     0   :  { %s3135_s18 = smov 0   ;;  %s5007_s0 = inlined_call_operand.vmem [shape: f32[2,4,256], index: 0, kind: input, shape index: {}]   ;;  %s5008_s1 = inlined_call_operand.vmem [shape: f32[4,4], index: 1, kind: input, shape index: {}]   ;;  %s5009_s2 = inlined_call_operand.vmem [shape: f32[4,1], index: 2, kind: input, shape index: {}]   ;;  %s5010_s3 = inlined_call_operand.vmem [shape: f32[4,36], index: 3, kind: input, shape index: {}]   ;;  %s5011_s4 = inlined_call_operand.vmem [shape: f32[4,1], index: 4, kind: input, shape index: {}]   ;;  %s5012_s5 = inlined_call_operand.vmem [shape: f32[2,4,256], index: 5, kind: output, shape index: {}]  }
   0x1 LB: > { %s2668_s19 = sadd.s32 4294967295, %s3089_s18   ;;  %p2672_p0 = scmp.ge.s32.totalorder %s3089_s18, 1  ;;  %s3089_s18 = sphi %s3135_s18, %s15_s18  }
   0x2   : > { %p187_p1 = scmp.lt.s32.totalorder %s3089_s18, 3 }
   0x4   : > { %p188_p2 = pnand %p2672_p0, %p187_p1 }
   0x6   : > { %191 = sbr.rel (%p188_p2) target bundleno = 1092 (0x444), region = 40 }
   0xb   : > { %p215_p3 = scmp.lt.s32.totalorder %s2668_s19, 1  ;;  %v3091_v0 = vmov 0   ;;  %v227_v1 = vld [vmem:[%s5009_s2] sm:$0xf]  ;;  %vm241_vm0 = vcmask 1043456   ;;  %vm237_vm1 = vcmask 31744  }
   0xc   : > { %2711 = vset.pattern.permute.xlu0 %v3091_v0  ;;  %3082 = vset.pattern.permute.xlu1 %v3091_v0  ;;  %v226_v3 = vld [vmem:[%s5008_s1] sm:$0xf]  ;;  %s3092_s28 = smov 64   ;;  %s3093_s29 = smov 96   ;;  %v3099_v23 = vmov 1983009808  }
   0xd   : > { %s5104_s19 = smov (!%p215_p3, %s2668_s19), 1  ;;  %230 = vperm.xlu0 %2711, %v227_v1   ;;  %s3094_s30 = smov 112   ;;  %v340_v24 = vunpack.c.l.s4 %v3099_v23  ;;  %vm337_vm4 = vcmask 1047556   ;;  %v3100_v36 = vmov 1934713408   ;;  %vm465_vm5 = vcmask 1040384  }
   0xe   : > { %s2687_s22 = sshll.u32 %s5104_s19, 3  ;;  %s3095_s6 = smov 48   ;;  %v366_v37 = vunpack.c.l.s4 %v3100_v36  ;;  %vm618_vm6 = vcmask 7168   ;;  %vm631_vm7 = vcmask 138240   ;;  %vm1257_vm8 = vcmask 1046528  }
   0xf   : > { %s219_s25 = scalar_lea.vmem %s5007_s0, %s2687_s22  ;;  %s3096_s7 = smov 80   ;;  %v3183_v27 = vunpack.c.0.s8 %v340_v24  ;;  %vm1880_vm9 = vcmask 1045504   ;;  %vm812_vm10 = vcmask 130048   ;;  %vm814_vm11 = vcmask 261120  }
  0x10   : > { %v225_v2 = vld [vmem:[%s219_s25] sm:$0xff]  ;;  %s3097_s8 = smov 32   ;;  %s3098_s9 = smov 16   ;;  %v3192_v44 = vunpack.c.0.s8 %v366_v37  ;;  %vm816_vm12 = vcmask 392192   ;;  %vm818_vm13 = vcmask 523264   ;;  %vm820_vm14 = vcmask 654336  }
  0x11   : > { %234 = vst [vmem:[#allocation1] ss:$2 sm:$0xff] %v225_v2  ;;  %s3101_s10 = smov 127   ;;  %s3102_s11 = smov 1   ;;  %vm822_vm15 = vcmask 785408  }
  0x12   : > { %s3103_s12 = smov 3   ;;  %s3104_s13 = smov 126  }
  0x13   : > { %s224_s23 = scalar_lea.vmem %s5012_s5, %s2687_s22 }
  0x18   : > { %v235_v4 = vld.sshfl [vmem:[#allocation1] sm:$0xff pattern:$0x75316420]  ;;  %v236_v5 = vld.sshfl [vmem:[#allocation1 + $0x8] sm:$0xff pattern:$0x75316420] }
  0x19   : > { %2677 = vmatpush.msk.msra.mxu0 %vm241_vm0, %v235_v4  ;;  %2679 = vmatpush.msk.msra.mxu1 %vm241_vm0, %v236_v5  ;;  %2598 = vst [vmem:[#allocation1] ss:$2 sm:$0xff] %v225_v2 }
  0x1a   : > { %2678 = vmatmul.msk.f32.vlgmr.msra.gmra.mxu0 %vm237_vm1, %v226_v3  ;;  %2680 = vmatmul.msk.f32.vlgmr.msra.gmra.mxu1 %vm237_vm1, %v226_v3  ;;  %vm824_vm1 = vcmask 916480  }
  0x7f   : > { %v231_v6 = vpop.permute.xlu0 %230 }
  0x97   : > { %v263_v7 = vpop.f32.mrf.mxu0  ;;  %v283_v11 = vpop.f32.mrf.mxu1 }
  0x98   : > { %v264_v8 = vadd.f32 %v263_v7, %v231_v6  ;;  %v284_v12 = vadd.f32 %v283_v11, %v231_v6 }
  0x9a   : > { %vm286_vm2 = vcmp.gt.f32.partialorder %v264_v8, 0.0  ;;  %v288_v9 = vmul.f32 0.2, %v264_v8  ;;  %v289_v13 = vmul.f32 0.2, %v284_v12  ;;  %vm287_vm3 = vcmp.gt.f32.partialorder %v284_v12, 0.0 }
  0x9c   : > { %v290_v10 = vsel %vm286_vm2, %v264_v8, %v288_v9  ;;  %v3165_v14 = vsel %vm287_vm3, %v284_v12, %v289_v13  ;;  %vm2542_vm2 = vcmask 293888  }
  0x9d   : > { %302 = vrot.lane.b32.xlu2 %v290_v10, %s3092_s28  ;;  %296 = vrot.lane.b32.xlu1 %v290_v10, %s3093_s29 }
  0x9e   : > { %293 = vrot.lane.b32.xlu0 %v290_v10, %s3094_s30 }
  0xa5   : > { %305 = vrot.lane.b32.xlu2 %v290_v10, %s3095_s6  ;;  %299 = vrot.lane.b32.xlu1 %v290_v10, %s3096_s7 }
  0xa6   : > { %308 = vrot.lane.b32.xlu0 %v290_v10, %s3097_s8 }
  0xad   : > { %315 = vrot.lane.b32.xlu2 %v3165_v14, %s3094_s30  ;;  %311 = vrot.lane.b32.xlu1 %v290_v10, %s3098_s9 }
  0xae   : > { %318 = vrot.lane.b32.xlu0 %v3165_v14, %s3093_s29 }
  0xb5   : > { %324 = vrot.lane.b32.xlu2 %v3165_v14, %s3092_s28  ;;  %321 = vrot.lane.b32.xlu1 %v3165_v14, %s3096_s7 }
  0xb6   : > { %327 = vrot.lane.b32.xlu0 %v3165_v14, %s3095_s6 }
  0xbd   : > { %333 = vrot.lane.b32.xlu2 %v3165_v14, %s3098_s9  ;;  %330 = vrot.lane.b32.xlu1 %v3165_v14, %s3097_s8 }
  0xf7   : > { %v303_v15 = vpop.permute.xlu2 %302 }
  0xff   : > { %v306_v16 = vpop.permute.xlu2 %305 }
 0x107   : > { %v316_v19 = vpop.permute.xlu2 %315 }
 0x10f   : > { %v297_v17 = vpop.permute.xlu1 %296  ;;  %v325_v26 = vpop.permute.xlu2 %324 }
 0x110   : > { %v294_v18 = vpop.permute.xlu0 %293  ;;  %v336_v28 = vrot.slane %v297_v17, 4 }
 0x112   : > { %v338_v34 = vsel %vm337_vm4, %v336_v28, %v290_v10 }
 0x113   : > { %v342_v41 = vperm.slane %v338_v34, %v3183_v27 }
 0x115   : > { %v363_v6 = vrot.slane %v342_v41, 4 }
 0x117   : > { %v300_v20 = vpop.permute.xlu1 %299  ;;  %v334_v45 = vpop.permute.xlu2 %333 }
 0x118   : > { %v343_v21 = vrot.slane %v300_v20, 4  ;;  %v309_v22 = vpop.permute.xlu0 %308  ;;  %v411_v53 = vrot.slane %v334_v45, 4 }
 0x119   : > { %v349_v29 = vrot.slane %v309_v22, 4 }
 0x11a   : > { %v344_v25 = vsel %vm337_vm4, %v343_v21, %v294_v18 }
 0x11b   : > { %v348_v30 = vperm.slane %v344_v25, %v3183_v27  ;;  %v350_v35 = vsel %vm337_vm4, %v349_v29, %v303_v15 }
 0x11c   : > { %v354_v42 = vperm.slane %v350_v35, %v3183_v27 }
 0x11d   : > { %v361_v39 = vrot.slane %v348_v30, 4  ;;  %v364_v10 = vsel %vm337_vm4, %v348_v30, %v363_v6 }
 0x11e   : > { %v375_v51 = vrot.slane %v354_v42, 4  ;;  %v372_v20 = vperm.slane %v364_v10, %v3192_v44 }
 0x11f   : > { %v312_v31 = vpop.permute.xlu1 %311  ;;  %v362_v48 = vsel %vm337_vm4, %v361_v39, %v342_v41 }
 0x120   : > { %v355_v32 = vrot.slane %v312_v31, 4  ;;  %v319_v33 = vpop.permute.xlu0 %318  ;;  %v368_v55 = vperm.slane %v362_v48, %v3192_v44  ;;  %v391_v39 = vrot.slane %v372_v20, 4 }
 0x121   : > { %v393_v58 = vrot.slane %v319_v33, 4 }
 0x122   : > { %v356_v38 = vsel %vm337_vm4, %v355_v32, %v306_v16  ;;  %v387_v1 = vrot.slane %v368_v55, 4 }
 0x123   : > { %v360_v40 = vperm.slane %v356_v38, %v3183_v27  ;;  %v394_v2 = vsel %vm337_vm4, %v393_v58, %v3165_v14 }
 0x124   : > { %v398_v11 = vperm.slane %v394_v2, %v3183_v27 }
 0x125   : > { %v373_v43 = vrot.slane %v360_v40, 4  ;;  %v376_v57 = vsel %vm337_vm4, %v360_v40, %v375_v51 }
 0x126   : > { %v384_v0 = vperm.slane %v376_v57, %v3192_v44  ;;  %v419_v40 = vrot.slane %v398_v11, 4 }
 0x127   : > { %v374_v46 = vsel %vm337_vm4, %v373_v43, %v354_v42  ;;  %v322_v47 = vpop.permute.xlu1 %321 }
 0x128   : > { %v380_v49 = vperm.slane %v374_v46, %v3192_v44  ;;  %v399_v50 = vrot.slane %v322_v47, 4  ;;  %v328_v52 = vpop.permute.xlu0 %327  ;;  %v389_v13 = vrot.slane %v384_v0, 4  ;;  %v392_v42 = vsel %vm337_vm4, %v384_v0, %v391_v39 }
 0x129   : > { %v412_v59 = vsel %vm337_vm4, %v411_v53, %v328_v52  ;;  %v456_v48 = vrot.slane %v392_v42, 1 }
 0x12a   : > { %v400_v54 = vsel %vm337_vm4, %v399_v50, %v316_v19  ;;  %v385_v56 = vrot.slane %v380_v49, 4  ;;  %v416_v3 = vperm.slane %v412_v59, %v3183_v27  ;;  %v388_v8 = vsel %vm337_vm4, %v380_v49, %v387_v1 }
 0x12b   : > { %v404_v61 = vperm.slane %v400_v54, %v3183_v27  ;;  %v454_v16 = vrot.slane %v388_v8, 1  ;;  %v469_v17 = vrot.slane %v388_v8, 7  ;;  %v390_v24 = vsel %vm337_vm4, %v389_v13, %v372_v20 }
 0x12c   : > { %v386_v60 = vsel %vm337_vm4, %v385_v56, %v368_v55  ;;  %v429_v14 = vrot.slane %v416_v3, 4  ;;  %v455_v29 = vrot.slane %v390_v24, 1  ;;  %v472_v33 = vrot.slane %v390_v24, 7 }
 0x12d   : > { %v453_v62 = vrot.slane %v386_v60, 1  ;;  %v466_v63 = vrot.slane %v386_v60, 7  ;;  %v417_v9 = vrot.slane %v404_v61, 4  ;;  %v3222_v23 = vsel %vm465_vm5, %v454_v16, %v469_v17 }
 0x12e   : > { %v496_v41 = vsel %vm465_vm5, %v455_v29, %v472_v33  ;;  %v420_v43 = vsel %vm337_vm4, %v404_v61, %v419_v40  ;;  %v475_v49 = vrot.slane %v392_v42, 7 }
 0x12f   : > { %v331_v4 = vpop.permute.xlu1 %330  ;;  %v3208_v5 = vsel %vm465_vm5, %v453_v62, %v466_v63  ;;  %v418_v18 = vsel %vm337_vm4, %v417_v9, %v398_v11  ;;  %v428_v50 = vperm.slane %v420_v43, %v3192_v44 }
 0x130   : > { %v405_v7 = vrot.slane %v331_v4, 4  ;;  %510 = vrot.lane.b32.xlu0 %v3208_v5, %s3101_s10  ;;  %v424_v25 = vperm.slane %v418_v18, %v3192_v44  ;;  %v497_v54 = vsel %vm465_vm5, %v456_v48, %v475_v49 }
 0x131   : > { %v447_v57 = vrot.slane %v428_v50, 4 }
 0x132   : > { %v406_v12 = vsel %vm337_vm4, %v405_v7, %v325_v26  ;;  %v443_v34 = vrot.slane %v424_v25, 4 }
 0x133   : > { %v410_v15 = vperm.slane %v406_v12, %v3183_v27 }
 0x135   : > { %v430_v19 = vsel %vm337_vm4, %v429_v14, %v410_v15  ;;  %v431_v22 = vrot.slane %v410_v15, 4 }
 0x136   : > { %v436_v21 = vperm.slane %v430_v19, %v3192_v44 }
 0x137   : > { %v432_v30 = vsel %vm337_vm4, %v416_v3, %v431_v22 }
 0x138   : > { %516 = vrot.lane.b32.xlu0 %v3222_v23, %s3101_s10  ;;  %v441_v26 = vrot.slane %v436_v21, 4  ;;  %v440_v37 = vperm.slane %v432_v30, %v3192_v44  ;;  %v444_v38 = vsel %vm337_vm4, %v436_v21, %v443_v34 }
 0x139   : > { %v470_v45 = vrot.slane %v444_v38, 7  ;;  %v487_v46 = vrot.slane %v444_v38, 5 }
 0x13a   : > { %v442_v28 = vsel %vm337_vm4, %v441_v26, %v424_v25  ;;  %v445_v47 = vrot.slane %v440_v37, 4  ;;  %v448_v60 = vsel %vm337_vm4, %v440_v37, %v447_v57 }
 0x13b   : > { %v467_v31 = vrot.slane %v442_v28, 7  ;;  %v486_v32 = vrot.slane %v442_v28, 5  ;;  %v499_v51 = vsel %vm465_vm5, %v470_v45, %v487_v46  ;;  %v471_v52 = vsel %vm465_vm5, %v469_v17, %v470_v45 }
 0x13c   : > { %v446_v53 = vsel %vm337_vm4, %v445_v47, %v428_v50  ;;  %v476_v61 = vrot.slane %v448_v60, 7  ;;  %v489_v62 = vrot.slane %v448_v60, 5 }
 0x13d   : > { %v498_v35 = vsel %vm465_vm5, %v467_v31, %v486_v32  ;;  %v468_v36 = vsel %vm465_vm5, %v466_v63, %v467_v31  ;;  %v473_v55 = vrot.slane %v446_v53, 7  ;;  %v488_v56 = vrot.slane %v446_v53, 5 }
 0x13e   : > { %514 = vrot.lane.b32.xlu2 %v498_v35, %s3101_s10  ;;  %512 = vrot.lane.b32.xlu1 %v468_v36, %s3101_s10  ;;  %v501_v63 = vsel %vm465_vm5, %v476_v61, %v489_v62  ;;  %v477_v0 = vsel %vm465_vm5, %v475_v49, %v476_v61 }
 0x13f   : > { %v500_v58 = vsel %vm465_vm5, %v473_v55, %v488_v56  ;;  %v474_v59 = vsel %vm465_vm5, %v472_v33, %v473_v55 }
 0x140   : > { %522 = vrot.lane.b32.xlu0 %v496_v41, %s3101_s10 }
 0x146   : > { %520 = vrot.lane.b32.xlu2 %v499_v51, %s3101_s10  ;;  %518 = vrot.lane.b32.xlu1 %v471_v52, %s3101_s10 }
 0x148   : > { %528 = vrot.lane.b32.xlu0 %v497_v54, %s3101_s10 }
 0x14e   : > { %526 = vrot.lane.b32.xlu2 %v500_v58, %s3101_s10  ;;  %524 = vrot.lane.b32.xlu1 %v474_v59, %s3101_s10 }
 0x150   : > { %546 = vrot.lane.b32.xlu0 %v3208_v5, %s3102_s11 }
 0x156   : > { %532 = vrot.lane.b32.xlu2 %v501_v63, %s3101_s10  ;;  %530 = vrot.lane.b32.xlu1 %v477_v0, %s3101_s10 }
 0x158   : > { %552 = vrot.lane.b32.xlu0 %v3222_v23, %s3102_s11 }
 0x15e   : > { %550 = vrot.lane.b32.xlu2 %v498_v35, %s3102_s11  ;;  %548 = vrot.lane.b32.xlu1 %v468_v36, %s3102_s11 }
 0x160   : > { %558 = vrot.lane.b32.xlu0 %v496_v41, %s3102_s11 }
 0x166   : > { %556 = vrot.lane.b32.xlu2 %v499_v51, %s3102_s11  ;;  %554 = vrot.lane.b32.xlu1 %v471_v52, %s3102_s11 }
 0x168   : > { %564 = vrot.lane.b32.xlu0 %v497_v54, %s3102_s11 }
 0x16e   : > { %562 = vrot.lane.b32.xlu2 %v500_v58, %s3102_s11  ;;  %560 = vrot.lane.b32.xlu1 %v474_v59, %s3102_s11 }
 0x170   : > { %582 = vrot.lane.b32.xlu0 %v3208_v5, %s3103_s12 }
 0x176   : > { %568 = vrot.lane.b32.xlu2 %v501_v63, %s3102_s11  ;;  %566 = vrot.lane.b32.xlu1 %v477_v0, %s3102_s11 }
 0x178   : > { %588 = vrot.lane.b32.xlu0 %v3222_v23, %s3103_s12 }
 0x17e   : > { %586 = vrot.lane.b32.xlu2 %v498_v35, %s3103_s12  ;;  %584 = vrot.lane.b32.xlu1 %v468_v36, %s3103_s12 }
 0x180   : > { %594 = vrot.lane.b32.xlu0 %v496_v41, %s3103_s12 }
 0x186   : > { %592 = vrot.lane.b32.xlu2 %v499_v51, %s3103_s12  ;;  %590 = vrot.lane.b32.xlu1 %v471_v52, %s3103_s12 }
 0x188   : > { %600 = vrot.lane.b32.xlu0 %v497_v54, %s3103_s12 }
 0x18e   : > { %598 = vrot.lane.b32.xlu2 %v500_v58, %s3103_s12  ;;  %596 = vrot.lane.b32.xlu1 %v474_v59, %s3103_s12 }
 0x196   : > { %604 = vrot.lane.b32.xlu2 %v501_v63, %s3103_s12  ;;  %602 = vrot.lane.b32.xlu1 %v477_v0, %s3103_s12 }
 0x198   : > { %v515_v1 = vpop.permute.xlu2 %514 }
 0x1a0   : > { %v521_v2 = vpop.permute.xlu2 %520 }
 0x1a2   : > { %v511_v3 = vpop.permute.xlu0 %510 }
 0x1a8   : > { %v527_v4 = vpop.permute.xlu2 %526 }
 0x1aa   : > { %v517_v6 = vpop.permute.xlu0 %516 }
 0x1b0   : > { %v533_v5 = vpop.permute.xlu2 %532  ;;  %v513_v7 = vpop.permute.xlu1 %512 }
 0x1b2   : > { %v523_v8 = vpop.permute.xlu0 %522 }
 0x1b8   : > { %v551_v9 = vpop.permute.xlu2 %550  ;;  %v519_v10 = vpop.permute.xlu1 %518 }
 0x1b9   : > { %v621_v31 = vsel %vm618_vm6, %v515_v1, %v551_v9 }
 0x1ba   : > { %v529_v11 = vpop.permute.xlu0 %528 }
 0x1c0   : > { %v557_v12 = vpop.permute.xlu2 %556  ;;  %v525_v13 = vpop.permute.xlu1 %524 }
 0x1c1   : > { %v624_v49 = vsel %vm618_vm6, %v521_v2, %v557_v12 }
 0x1c2   : > { %v547_v14 = vpop.permute.xlu0 %546 }
 0x1c3   : > { %v619_v32 = vsel %vm618_vm6, %v511_v3, %v547_v14 }
 0x1c8   : > { %v563_v15 = vpop.permute.xlu2 %562  ;;  %v531_v16 = vpop.permute.xlu1 %530 }
 0x1c9   : > { %v627_v57 = vsel %vm618_vm6, %v527_v4, %v563_v15 }
 0x1ca   : > { %v553_v17 = vpop.permute.xlu0 %552 }
 0x1cb   : > { %v622_v58 = vsel %vm618_vm6, %v517_v6, %v553_v17 }
 0x1d0   : > { %v569_v18 = vpop.permute.xlu2 %568  ;;  %v549_v19 = vpop.permute.xlu1 %548 }
 0x1d1   : > { %v620_v35 = vsel %vm618_vm6, %v513_v7, %v549_v19  ;;  %v630_v59 = vsel %vm618_vm6, %v533_v5, %v569_v18 }
 0x1d2   : > { %v559_v20 = vpop.permute.xlu0 %558 }
 0x1d3   : > { %v625_v36 = vsel %vm618_vm6, %v523_v8, %v559_v20 }
 0x1d8   : > { %v587_v21 = vpop.permute.xlu2 %586  ;;  %v555_v22 = vpop.permute.xlu1 %554 }
 0x1d9   : > { %v634_v33 = vsel %vm631_vm7, %v621_v31, %v587_v21  ;;  %v623_v2 = vsel %vm618_vm6, %v519_v10, %v555_v22 }
 0x1da   : > { %v565_v23 = vpop.permute.xlu0 %564  ;;  %v1261_v38 = vrot.slane %v634_v33, 1  ;;  %v1884_v50 = vrot.slane %v634_v33, 2 }
 0x1db   : > { %v628_v3 = vsel %vm618_vm6, %v529_v11, %v565_v23 }
 0x1e0   : > { %v561_v24 = vpop.permute.xlu1 %560  ;;  %v593_v25 = vpop.permute.xlu2 %592 }
 0x1e1   : > { %v637_v53 = vsel %vm631_vm7, %v624_v49, %v593_v25  ;;  %v626_v6 = vsel %vm618_vm6, %v525_v13, %v561_v24 }
 0x1e2   : > { %v583_v26 = vpop.permute.xlu0 %582  ;;  %v1266_v4 = vrot.slane %v637_v53, 1  ;;  %v1889_v7 = vrot.slane %v637_v53, 2 }
 0x1e3   : > { %v632_v34 = vsel %vm631_vm7, %v619_v32, %v583_v26 }
 0x1e4   : > { %v646_v40 = vrot.slane %v632_v34, 4  ;;  %v1258_v41 = vrot.slane %v632_v34, 1  ;;  %v1881_v42 = vrot.slane %v632_v34, 2 }
 0x1e8   : > { %v567_v28 = vpop.permute.xlu1 %566  ;;  %v599_v30 = vpop.permute.xlu2 %598 }
 0x1e9   : > { %v3300_v62 = vsel %vm631_vm7, %v627_v57, %v599_v30  ;;  %v3311_v8 = vsel %vm618_vm6, %v531_v16, %v567_v28 }
 0x1ea   : > { %v589_v29 = vpop.permute.xlu0 %588  ;;  %v1271_v14 = vrot.slane %v3300_v62, 1  ;;  %v1894_v10 = vrot.slane %v3300_v62, 2 }
 0x1eb   : > { %v635_v63 = vsel %vm631_vm7, %v622_v58, %v589_v29 }
 0x1ec   : > { %v658_v15 = vrot.slane %v635_v63, 4  ;;  %v1263_v13 = vrot.slane %v635_v63, 1  ;;  %v1886_v18 = vrot.slane %v635_v63, 2 }
 0x1f0   : > { %v585_v37 = vpop.permute.xlu1 %584  ;;  %v605_v60 = vpop.permute.xlu2 %604 }
 0x1f1   : > { %v3268_v39 = vsel %vm631_vm7, %v620_v35, %v585_v37  ;;  %v3314_v9 = vsel %vm631_vm7, %v630_v59, %v605_v60 }
 0x1f2   : > { %v1259_v43 = vrot.slane %v3268_v39, 1  ;;  %v595_v45 = vpop.permute.xlu0 %594  ;;  %v1882_v46 = vrot.slane %v3268_v39, 2  ;;  %v3276_v48 = vpack.i.bf16 %v3268_v39, %v632_v34  ;;  %v1276_v20 = vrot.slane %v3314_v9, 1 }
 0x1f3   : > { %v3273_v47 = vsel %vm631_vm7, %v625_v36, %v595_v45  ;;  %v1899_v24 = vrot.slane %v3314_v9, 2  ;;  %v702_v25 = vrot.slane %v3268_v39, 4 }
 0x1f4   : > { %v644_v51 = vrot.slane %v3273_v47, 4  ;;  %v647_v52 = vsel %vm337_vm4, %v3273_v47, %v646_v40  ;;  %2713 = vrot.lane.b32.xlu1 %v3276_v48, %s3101_s10  ;;  %v3286_v54 = vsel %vm1257_vm8, %v1258_v41, %v1259_v43  ;;  %v3289_v55 = vsel %vm1257_vm8, %v1259_v43, %v1261_v38 }
 0x1f5   : > { %v3292_v56 = vsel %vm1880_vm9, %v1881_v42, %v1882_v46  ;;  %v2752_v61 = vpack.i.bf16 %v3289_v55, %v3286_v54  ;;  %v3304_v0 = vsel %vm1880_vm9, %v1882_v46, %v1884_v50  ;;  %v3325_v16 = vperm.slane %v647_v52, %v3183_v27 }
 0x1f6   : > { %v645_v1 = vsel %vm337_vm4, %v644_v51, %v632_v34  ;;  %v1268_v29 = vrot.slane %v3273_v47, 1  ;;  %v1891_v30 = vrot.slane %v3273_v47, 2  ;;  %v1344_v31 = vrot.slane %v3289_v55, 4 }
 0x1f7   : > { %v3337_v23 = vperm.slane %v645_v1, %v3183_v27  ;;  %v1288_v32 = vrot.slane %v3286_v54, 4  ;;  %v682_v35 = vrot.slane %v3325_v16, 4 }
 0x1f8   : > { %v591_v5 = vpop.permute.xlu1 %590 }
 0x1f9   : > { %v3317_v12 = vsel %vm631_vm7, %v623_v2, %v591_v5  ;;  %v670_v41 = vrot.slane %v3337_v23, 4 }
 0x1fa   : > { %v601_v11 = vpop.permute.xlu0 %600  ;;  %v3322_v17 = vpack.i.bf16 %v3317_v12, %v635_v63  ;;  %v1264_v26 = vrot.slane %v3317_v12, 1  ;;  %v1887_v28 = vrot.slane %v3317_v12, 2  ;;  %v714_v33 = vrot.slane %v3317_v12, 4 }
 0x1fb   : > { %v3328_v19 = vsel %vm631_vm7, %v628_v3, %v601_v11 }
 0x1fc   : > { %v656_v21 = vrot.slane %v3328_v19, 4  ;;  %v659_v22 = vsel %vm337_vm4, %v3328_v19, %v658_v15  ;;  %2718 = vrot.lane.b32.xlu2 %v3322_v17, %s3101_s10  ;;  %v1273_v36 = vrot.slane %v3328_v19, 1  ;;  %v1896_v37 = vrot.slane %v3328_v19, 2 }
 0x1fd   : > { %v3349_v34 = vperm.slane %v659_v22, %v3183_v27  ;;  %v3358_v43 = vsel %vm1880_vm9, %v1887_v28, %v1889_v7  ;;  %v3361_v45 = vsel %vm1257_vm8, %v1263_v13, %v1264_v26  ;;  %v3367_v52 = vsel %vm1257_vm8, %v1264_v26, %v1266_v4 }
 0x1fe   : > { %v657_v40 = vsel %vm337_vm4, %v656_v21, %v635_v63  ;;  %v3371_v57 = vsel %vm1880_vm9, %v1886_v18, %v1887_v28  ;;  %v1979_v4 = vrot.slane %v3358_v43, 4  ;;  %v2757_v5 = vpack.i.bf16 %v3367_v52, %v3361_v45 }
 0x1ff   : > { %v683_v46 = vsel %vm337_vm4, %v3349_v34, %v682_v35  ;;  %v3374_v58 = vperm.slane %v657_v40, %v3183_v27  ;;  %v1300_v11 = vrot.slane %v3361_v45, 4  ;;  %v680_v13 = vrot.slane %v3349_v34, 4 }
 0x200   : > { %v597_v38 = vpop.permute.xlu1 %596 }
 0x201   : > { %v639_v42 = vsel %vm631_vm7, %v626_v6, %v597_v38  ;;  %v1356_v6 = vrot.slane %v3367_v52, 4 }
 0x202   : > { %v703_v49 = vsel %vm337_vm4, %v639_v42, %v702_v25  ;;  %v1269_v50 = vrot.slane %v639_v42, 1  ;;  %v1892_v51 = vrot.slane %v639_v42, 2  ;;  %v2742_v53 = vpack.i.bf16 %v639_v42, %v3273_v47 }
 0x203   : > { %v3377_v59 = vperm.slane %v703_v49, %v3183_v27  ;;  %v700_v1 = vrot.slane %v639_v42, 4  ;;  %v3413_v25 = vperm.slane %v683_v46, %v3192_v44 }
 0x204   : > { %v3380_v60 = vsel %vm1257_vm8, %v1268_v29, %v1269_v50  ;;  %v3383_v62 = vsel %vm1257_vm8, %v1269_v50, %v1271_v14  ;;  %v3386_v63 = vsel %vm1880_vm9, %v1891_v30, %v1892_v51  ;;  %2743 = vrot.lane.b32.xlu2 %v2742_v53, %s3104_s13  ;;  %2723 = vrot.lane.b32.xlu0 %v2742_v53, %s3101_s10 }
 0x205   : > { %v1342_v47 = vrot.slane %v3383_v62, 4  ;;  %v2762_v2 = vpack.i.bf16 %v3383_v62, %v3380_v60  ;;  %v1286_v3 = vrot.slane %v3380_v60, 4  ;;  %v3410_v22 = vsel %vm1880_vm9, %v1892_v51, %v1894_v10 }
 0x206   : > { %v738_v26 = vrot.slane %v3377_v59, 4  ;;  %v671_v30 = vsel %vm337_vm4, %v3374_v58, %v670_v41  ;;  %v701_v34 = vsel %vm337_vm4, %v700_v1, %v3268_v39 }
 0x207   : > { %v1343_v14 = vsel %vm337_vm4, %v1342_v47, %v3289_v55  ;;  %v1287_v15 = vsel %vm337_vm4, %v1286_v3, %v3286_v54 }
 0x208   : > { %v603_v18 = vpop.permute.xlu1 %602  ;;  %v3407_v21 = vperm.slane %v1343_v14, %v3183_v27  ;;  %v3419_v29 = vperm.slane %v1287_v15, %v3183_v27 }
 0x209   : > { %v642_v28 = vsel %vm631_vm7, %v3311_v8, %v603_v18  ;;  %v3429_v8 = vperm.slane %v671_v30, %v3192_v44 }
 0x20a   : > { %v712_v35 = vrot.slane %v642_v28, 4  ;;  %v715_v10 = vsel %vm337_vm4, %v642_v28, %v714_v33  ;;  %v1274_v38 = vrot.slane %v642_v28, 1  ;;  %v1897_v40 = vrot.slane %v642_v28, 2 }
 0x20b   : > { %v2727_v42 = vpack.i.bf16 %v642_v28, %v3328_v19  ;;  %v723_v46 = vperm.slane %v715_v10, %v3183_v27  ;;  %v707_v28 = vperm.slane %v701_v34, %v3183_v27  ;;  %v668_v10 = vrot.slane %v3374_v58, 4 }
 0x20c   : > { %v3434_v49 = vsel %vm1880_vm9, %v1897_v40, %v1899_v24  ;;  %v3437_v41 = vsel %vm1880_vm9, %v1896_v37, %v1897_v40  ;;  %v3442_v39 = vsel %vm1257_vm8, %v1274_v38, %v1276_v20  ;;  %v3445_v19 = vsel %vm1257_vm8, %v1273_v36, %v1274_v38  ;;  %2733 = vrot.lane.b32.xlu0 %v3276_v48, %s3104_s13 }
 0x20d   : > { %2763 = vrot.lane.b32.xlu2 %v2762_v2, %s3101_s10  ;;  %v2772_v24 = vpack.i.bf16 %v3358_v43, %v3434_v49  ;;  %v1977_v33 = vrot.slane %v3434_v49, 4  ;;  %v3455_v37 = vsel %vm337_vm4, %v3434_v49, %v1979_v4  ;;  %v2782_v9 = vpack.i.bf16 %v3437_v41, %v3410_v22  ;;  %2728 = vrot.lane.b32.xlu1 %v2727_v42, %s3101_s10 }
 0x20e   : > { %v1921_v20 = vrot.slane %v3437_v41, 4  ;;  %v2777_v48 = vpack.i.bf16 %v3367_v52, %v3442_v39  ;;  %v1354_v36 = vrot.slane %v3442_v39, 4  ;;  %v1357_v50 = vsel %vm337_vm4, %v3442_v39, %v1356_v6 }
 0x20f   : > { %v3468_v51 = vsel %vm337_vm4, %v1977_v33, %v3358_v43  ;;  %v1365_v53 = vperm.slane %v1357_v50, %v3183_v27  ;;  %v2767_v1 = vpack.i.bf16 %v3442_v39, %v3445_v19  ;;  %v1298_v47 = vrot.slane %v3445_v19, 4 }
 0x210   : > { %v1355_v2 = vsel %vm337_vm4, %v1354_v36, %v3367_v52  ;;  %v1301_v3 = vsel %vm337_vm4, %v3445_v19, %v1300_v11  ;;  %v3480_v4 = vsel %vm337_vm4, %v1921_v20, %v3371_v57  ;;  %v2787_v6 = vpack.i.bf16 %v3445_v19, %v3383_v62 }
 0x211   : > { %v1299_v14 = vsel %vm337_vm4, %v1298_v47, %v3361_v45  ;;  %v1309_v15 = vperm.slane %v1301_v3, %v3183_v27  ;;  %v739_v18 = vsel %vm337_vm4, %v723_v46, %v738_v26  ;;  %v713_v11 = vsel %vm337_vm4, %v712_v35, %v3317_v12 }
 0x212   : > { %v3490_v30 = vperm.slane %v739_v18, %v3192_v44  ;;  %v694_v38 = vrot.slane %v3429_v8, 4  ;;  %v719_v40 = vperm.slane %v713_v11, %v3183_v27  ;;  %v726_v33 = vrot.slane %v707_v28, 4 }
 0x213   : > { %v681_v20 = vsel %vm337_vm4, %v680_v13, %v3325_v16  ;;  %v736_v36 = vrot.slane %v723_v46, 4  ;;  %v1289_v12 = vsel %vm337_vm4, %v3380_v60, %v1288_v32  ;;  %v1345_v47 = vsel %vm337_vm4, %v3383_v62, %v1344_v31 }
 0x214   : > { %v2822_v26 = vpack.i.bf16 %v3490_v30, %v3413_v25  ;;  %v3502_v34 = vsel %vm337_vm4, 0.0, %v694_v38  ;;  %v3505_v50 = vperm.slane %v681_v20, %v3192_v44  ;;  %2748 = vrot.lane.b32.xlu0 %v2727_v42, %s3104_s13  ;;  %v724_v16 = vrot.slane %v719_v40, 4 }
 0x215   : > { %2773 = vrot.lane.b32.xlu2 %v2772_v24, %s3101_s10  ;;  %v727_v58 = vsel %vm337_vm4, %v719_v40, %v726_v33  ;;  %v737_v13 = vsel %vm337_vm4, %v736_v36, %v3377_v59  ;;  %v1297_v35 = vperm.slane %v1289_v12, %v3183_v27  ;;  %2738 = vrot.lane.b32.xlu1 %v3322_v17, %s3104_s13  ;;  %v1322_v42 = vrot.slane %v1309_v15, 4 }
 0x216   : > { %v3520_v46 = vperm.slane %v727_v58, %v3192_v44  ;;  %v3523_v32 = vperm.slane %v737_v13, %v3192_v44  ;;  %v696_v24 = vrot.slane %v3505_v50, 4  ;;  %v1378_v59 = vrot.slane %v1365_v53, 4 }
 0x217   : > { %v1324_v3 = vrot.slane %v1297_v35, 4  ;;  %v1305_v18 = vperm.slane %v1299_v14, %v3183_v27  ;;  %v1323_v20 = vsel %vm337_vm4, %v1322_v42, %v1297_v35  ;;  %v1353_v31 = vperm.slane %v1345_v47, %v3183_v27 }
 0x218   : > { %v750_v11 = vrot.slane %v3520_v46, 4  ;;  %v3537_v40 = vsel %vm337_vm4, 0.0, %v696_v24  ;;  %v752_v33 = vrot.slane %v3523_v32, 4  ;;  %v3547_v12 = vperm.slane %v1323_v20, %v3192_v44 }
 0x219   : > { %v1325_v36 = vsel %vm337_vm4, %v1309_v15, %v1324_v3  ;;  %v1310_v13 = vrot.slane %v1305_v18, 4  ;;  %v1379_v35 = vsel %vm337_vm4, %v1378_v59, %v1353_v31  ;;  %v1380_v42 = vrot.slane %v1353_v31, 4 }
 0x21a   : > { %v3544_v14 = vsel %vm337_vm4, 0.0, %v750_v11  ;;  %v3550_v58 = vperm.slane %v1325_v36, %v3192_v44  ;;  %v3555_v38 = vsel %vm337_vm4, 0.0, %v752_v33  ;;  %v3561_v47 = vperm.slane %v1379_v35, %v3192_v44 }
 0x21b   : > { %v3565_v3 = vsel %vm337_vm4, %v1310_v13, %v3419_v29  ;;  %v1361_v11 = vperm.slane %v1355_v2, %v3183_v27  ;;  %v1381_v59 = vsel %vm337_vm4, %v1365_v53, %v1380_v42  ;;  %v3579_v33 = vsel %vm337_vm4, %v668_v10, %v3337_v23 }
 0x21c   : > { %2753 = vrot.lane.b32.xlu0 %v2752_v61, %s3101_s10  ;;  %v1312_v20 = vrot.slane %v3419_v29, 4  ;;  %v1965_v61 = vrot.slane %v3410_v22, 4  ;;  %v1909_v31 = vrot.slane %v3386_v63, 4  ;;  %v3594_v23 = vsel %vm337_vm4, %v724_v16, %v707_v28 }
 0x21d   : > { %2783 = vrot.lane.b32.xlu2 %v2782_v9, %s3101_s10  ;;  %2758 = vrot.lane.b32.xlu1 %v2757_v5, %s3101_s10  ;;  %v3590_v9 = vperm.slane %v1381_v59, %v3192_v44  ;;  %v1366_v53 = vrot.slane %v1361_v11, 4  ;;  %v1368_v10 = vrot.slane %v3407_v21, 4  ;;  %v1911_v13 = vrot.slane %v3292_v56, 4 }
 0x21e   : > { %v1313_v29 = vsel %vm337_vm4, %v1305_v18, %v1312_v20  ;;  %v1966_v28 = vsel %vm337_vm4, %v1965_v61, %v3304_v0  ;;  %v1967_v16 = vrot.slane %v3304_v0, 4  ;;  %v1340_v59 = vrot.slane %v3550_v58, 4 }
 0x21f   : > { %v3602_v36 = vsel %vm337_vm4, %v1366_v53, %v3407_v21  ;;  %v3606_v35 = vperm.slane %v1313_v29, %v3192_v44  ;;  %v1369_v42 = vsel %vm337_vm4, %v1361_v11, %v1368_v10  ;;  %v1910_v21 = vsel %vm337_vm4, %v1909_v31, %v3292_v56 }
 0x220   : > { %v3613_v18 = vperm.slane %v1369_v42, %v3192_v44  ;;  %v1396_v53 = vrot.slane %v3590_v9, 4  ;;  %v698_v29 = vrot.slane %v3413_v25, 4  ;;  %v1912_v11 = vsel %vm337_vm4, %v3386_v63, %v1911_v13 }
 0x221   : > { %v1336_v20 = vrot.slane %v3606_v35, 4  ;;  %v3625_v10 = vsel %vm337_vm4, 0.0, %v1340_v59  ;;  %v754_v42 = vrot.slane %v3490_v30, 4  ;;  %v1972_v31 = vperm.slane %v1966_v28, %v3183_v27 }
 0x222   : > { %v1392_v61 = vrot.slane %v3613_v18, 4  ;;  %v1923_v5 = vrot.slane %v3371_v57, 4  ;;  %v3640_v59 = vsel %vm337_vm4, 0.0, %v1396_v53  ;;  %v1916_v15 = vperm.slane %v1910_v21, %v3183_v27 }
 0x223   : > { %v3637_v13 = vsel %vm337_vm4, 0.0, %v1336_v20  ;;  %v3653_v28 = vsel %vm337_vm4, 0.0, %v698_v29  ;;  %v3658_v53 = vsel %vm337_vm4, 0.0, %v754_v42  ;;  %v1920_v39 = vperm.slane %v1912_v11, %v3183_v27 }
 0x224   : > { %2768 = vrot.lane.b32.xlu0 %v2767_v1, %s3101_s10  ;;  %v3648_v2 = vsel %vm337_vm4, 0.0, %v1392_v61  ;;  %v1924_v21 = vsel %vm337_vm4, %v3437_v41, %v1923_v5  ;;  %v1338_v29 = vrot.slane %v3547_v12, 4  ;;  %v1394_v61 = vrot.slane %v3561_v47, 4 }
 0x225   : > { %2309 = vrot.lane.b32.xlu2 %v3437_v41, %s3104_s13  ;;  %2778 = vrot.lane.b32.xlu1 %v2777_v48, %s3104_s13  ;;  %v1932_v20 = vperm.slane %v1924_v21, %v3183_v27  ;;  %v1947_v1 = vrot.slane %v1920_v39, 4  ;;  %v1984_v42 = vperm.slane %v3468_v51, %v3183_v27  ;;  %v1991_v17 = vrot.slane %v1972_v31, 4 }
 0x226   : > { %v3673_v52 = vsel %vm337_vm4, 0.0, %v1338_v29  ;;  %v3676_v11 = vsel %vm337_vm4, 0.0, %v1394_v61  ;;  %v1928_v41 = vperm.slane %v3480_v4, %v3183_v27  ;;  %v1935_v5 = vrot.slane %v1916_v15, 4 }
 0x227   : > { %v2797_v48 = vpack.i.bf16 %v3292_v56, %v3386_v63  ;;  %v1948_v21 = vsel %vm337_vm4, %v1932_v20, %v1947_v1  ;;  %v3686_v51 = vsel %vm337_vm4, %v1984_v42, %v1991_v17  ;;  %v1968_v4 = vsel %vm337_vm4, %v3410_v22, %v1967_v16 }
 0x228   : > { %v3689_v29 = vsel %vm337_vm4, %v1928_v41, %v1935_v5  ;;  %v1988_v1 = vperm.slane %v3455_v37, %v3183_v27  ;;  %v1989_v61 = vrot.slane %v1984_v42, 4  ;;  %v1976_v17 = vperm.slane %v1968_v4, %v3183_v27 }
 0x229   : > { %v1945_v24 = vrot.slane %v1932_v20, 4  ;;  %v3754_v62 = vperm.slane %v3565_v3, %v3192_v44  ;;  %v5042_v25 = vpack.i.bf16 %v3523_v32, %v3505_v50  ;;  %v5044_v19 = vpack.i.bf16 %v3555_v38, %v3537_v40 }
 0x22a   : > { %v2001_v5 = vrot.slane %v1988_v1, 4  ;;  %v2003_v7 = vrot.slane %v1976_v17, 4  ;;  %v3711_v37 = vsel %vm337_vm4, %v1989_v61, %v1972_v31  ;;  %v5045_v38 = vpack.i.bf16 %v3590_v9, %v3550_v58 }
 0x22b   : > { %v5049_v58 = vpack.i.bf16 %v3613_v18, %v3606_v35  ;;  %v5051_v35 = vpack.i.bf16 %v3676_v11, %v3673_v52 }
 0x22c   : > { %2311 = vrot.lane.b32.xlu0 %v3434_v49, %s3104_s13  ;;  %v3705_v49 = vsel %vm337_vm4, %v2001_v5, %v1976_v17  ;;  %v3708_v16 = vsel %vm337_vm4, %v1988_v1, %v2003_v7 }
 0x22d   : > { %2798 = vrot.lane.b32.xlu2 %v2797_v48, %s3101_s10  ;;  %2307 = vrot.lane.b32.xlu1 %v3410_v22, %s3104_s13  ;;  %v3702_v48 = vsel %vm337_vm4, %v1945_v24, %v1920_v39  ;;  %v2792_v22 = vpack.i.bf16 %v3371_v57, %v3304_v0  ;;  %v1933_v24 = vrot.slane %v1928_v41, 4 }
 0x22f   : > { %v3721_v20 = vsel %vm337_vm4, %v1933_v24, %v1916_v15  ;;  %v5047_v15 = vpack.i.bf16 %v3658_v53, %v3653_v28 }
 0x230   : > { %5038 = vst [vmem:[#allocation2_spill] sm:$0xff] %v3721_v20 }
 0x234   : > { %2303 = vrot.lane.b32.xlu0 %v3358_v43, %s3104_s13  ;;  %v2802_v43 = vpack.i.bf16 %v3361_v45, %v3289_v55  ;;  %v3762_v55 = vperm.slane %v3594_v23, %v3192_v44  ;;  %v3766_v45 = vperm.slane %v3579_v33, %v3192_v44  ;;  %v3817_v33 = vperm.slane %v1948_v21, %v3192_v44 }
 0x235   : > { %2305 = vrot.lane.b32.xlu2 %v3386_v63, %s3104_s13  ;;  %2793 = vrot.lane.b32.xlu1 %v2792_v22, %s3101_s10 }
 0x236   : > { %v748_v7 = vrot.slane %v3762_v55, 4  ;;  %5050 = vst [vmem:[#allocation3_spill] sm:$0xff] %v3817_v33 }
 0x23c   : > { %2788 = vrot.lane.b32.xlu0 %v2787_v6, %s3104_s13  ;;  %v692_v6 = vrot.slane %v3766_v45, 4 }
 0x23d   : > { %2297 = vrot.lane.b32.xlu2 %v3292_v56, %s3104_s13  ;;  %2301 = vrot.lane.b32.xlu1 %v3371_v57, %s3104_s13  ;;  %v5039_v56 = vpack.i.bf16 %v3286_v54, %v3380_v60  ;;  %v5040_v57 = vpack.i.bf16 %v3544_v14, %v3502_v34  ;;  %v3758_v54 = vperm.slane %v3602_v36, %v3192_v44  ;;  %v1334_v60 = vrot.slane %v3754_v62, 4 }
 0x23e   : > { %v749_v34 = vsel %vm337_vm4, 0.0, %v748_v7  ;;  %v693_v50 = vsel %vm337_vm4, 0.0, %v692_v6 }
 0x23f   : > { %v1390_v63 = vrot.slane %v3758_v54, 4  ;;  %v1335_v30 = vsel %vm337_vm4, 0.0, %v1334_v60  ;;  %v2827_v14 = vpack.i.bf16 %v749_v34, %v693_v50 }
 0x244   : > { %2299 = vrot.lane.b32.xlu0 %v3304_v0, %s3104_s13  ;;  %v5041_v0 = vpack.i.bf16 %v3520_v46, %v3429_v8  ;;  %v5043_v8 = vpack.i.bf16 %v3561_v47, %v3547_v12  ;;  %v5046_v12 = vpack.i.bf16 %v3640_v59, %v3625_v10  ;;  %v5048_v47 = vpack.i.bf16 %v3648_v2, %v3637_v13 }
 0x245   : > { %2823 = vrot.lane.b32.xlu2 %v2822_v26, %s3093_s29  ;;  %2808 = vrot.lane.b32.xlu1 %v5039_v56, %s3104_s13  ;;  %v1391_v26 = vsel %vm337_vm4, 0.0, %v1390_v63 }
 0x246   : > { %v2862_v32 = vpack.i.bf16 %v1391_v26, %v1335_v30 }
 0x24c   : > { %2803 = vrot.lane.b32.xlu0 %v2802_v43, %s3104_s13 }
 0x24d   : > { %2833 = vrot.lane.b32.xlu2 %v5040_v57, %s3095_s6  ;;  %2813 = vrot.lane.b32.xlu1 %v5041_v0, %s3097_s8 }
 0x254   : > { %2818 = vrot.lane.b32.xlu0 %v5042_v25, %s3092_s28 }
 0x255   : > { %2853 = vrot.lane.b32.xlu2 %v5043_v8, %s3092_s28  ;;  %2838 = vrot.lane.b32.xlu1 %v5044_v19, %s3096_s7 }
 0x256   : > { %v3788_v46 = vpop.permute.xlu2 %2718 }
 0x257   : > { %v2721_v39 = vunpack.i.h.bf16 %v3788_v46  ;;  %v2720_v41 = vunpack.i.l.bf16 %v3788_v46 }
 0x259   : > { %v935_v24 = vrot.slane %v2721_v39, 4  ;;  %v879_v0 = vrot.slane %v2720_v41, 4 }
 0x25c   : > { %2828 = vrot.lane.b32.xlu0 %v2827_v14, %s3098_s9 }
 0x25d   : > { %2863 = vrot.lane.b32.xlu2 %v2862_v32, %s3098_s9  ;;  %2858 = vrot.lane.b32.xlu1 %v5045_v38, %s3093_s29 }
 0x25e   : > { %v3796_v40 = vpop.permute.xlu2 %2743 }
 0x25f   : > { %v2746_v61 = vunpack.i.h.bf16 %v3796_v40  ;;  %v2745_v17 = vunpack.i.l.bf16 %v3796_v40 }
 0x261   : > { %v1127_v25 = vrot.slane %v2746_v61, 4  ;;  %v1071_v8 = vrot.slane %v2745_v17, 4 }
 0x264   : > { %2843 = vrot.lane.b32.xlu0 %v5047_v15, %s3094_s30 }
 0x265   : > { %2878 = vrot.lane.b32.xlu2 %v5046_v12, %s3094_s30  ;;  %2868 = vrot.lane.b32.xlu1 %v5048_v47, %s3095_s6 }
 0x266   : > { %v2714_v9 = vpop.permute.xlu1 %2713 }
 0x267   : > { %v3814_v3 = vpop.permute.xlu2 %2763  ;;  %v2716_v31 = vunpack.i.h.bf16 %v2714_v9  ;;  %v2715_v13 = vunpack.i.l.bf16 %v2714_v9 }
 0x269   : > { %v923_v18 = vrot.slane %v2716_v31, 4  ;;  %v867_v53 = vrot.slane %v2715_v13, 4 }
 0x26c   : > { %2848 = vrot.lane.b32.xlu0 %v5049_v58, %s3097_s8 }
 0x26f   : > { %v3821_v36 = vpop.permute.xlu2 %2773 }
 0x270   : > { %v2775_v19 = vunpack.i.l.bf16 %v3821_v36 }
 0x274   : > { %2042 = vrot.lane.b32.xlu0 %v3817_v33, %s3093_s29 }
 0x276   : > { %v2724_v23 = vpop.permute.xlu0 %2723 }
 0x277   : > { %v2726_v10 = vunpack.i.h.bf16 %v2724_v23  ;;  %v2725_v2 = vunpack.i.l.bf16 %v2724_v23  ;;  %v3835_v56 = vpop.permute.xlu2 %2783 }
 0x279   : > { %v921_v59 = vrot.slane %v2726_v10, 4  ;;  %v865_v28 = vrot.slane %v2725_v2, 4  ;;  %v924_v21 = vsel %vm337_vm4, %v2726_v10, %v923_v18  ;;  %v868_v4 = vsel %vm337_vm4, %v2725_v2, %v867_v53 }
 0x27a   : > { %v932_v43 = vperm.slane %v924_v21, %v3183_v27  ;;  %v876_v57 = vperm.slane %v868_v4, %v3183_v27 }
 0x27b   : > { %v922_v5 = vsel %vm337_vm4, %v921_v59, %v2716_v31  ;;  %v866_v52 = vsel %vm337_vm4, %v865_v28, %v2715_v13 }
 0x27c   : > { %2873 = vrot.lane.b32.xlu0 %v5051_v35, %s3096_s7  ;;  %v3840_v60 = vperm.slane %v922_v5, %v3183_v27  ;;  %v3843_v63 = vperm.slane %v866_v52, %v3183_v27  ;;  %v959_v34 = vrot.slane %v932_v43, 4  ;;  %v903_v50 = vrot.slane %v876_v57, 4 }
 0x27e   : > { %v2734_v42 = vpop.permute.xlu0 %2733  ;;  %v947_v38 = vrot.slane %v3840_v60, 4  ;;  %v891_v40 = vrot.slane %v3843_v63, 4 }
 0x27f   : > { %v2729_v1 = vpop.permute.xlu1 %2728  ;;  %v2735_v7 = vunpack.i.l.bf16 %v2734_v42  ;;  %v2736_v26 = vunpack.i.h.bf16 %v2734_v42 }
 0x280   : > { %v2731_v11 = vunpack.i.h.bf16 %v2729_v1  ;;  %v2730_v22 = vunpack.i.l.bf16 %v2729_v1 }
 0x281   : > { %v1072_v12 = vsel %vm337_vm4, %v1071_v8, %v2735_v7  ;;  %v1073_v15 = vrot.slane %v2735_v7, 4  ;;  %v1128_v2 = vsel %vm337_vm4, %v1127_v25, %v2736_v26  ;;  %v1129_v31 = vrot.slane %v2736_v26, 4 }
 0x282   : > { %v936_v6 = vsel %vm337_vm4, %v2731_v11, %v935_v24  ;;  %v880_v30 = vsel %vm337_vm4, %v2730_v22, %v879_v0  ;;  %v933_v46 = vrot.slane %v2731_v11, 4  ;;  %v877_v32 = vrot.slane %v2730_v22, 4  ;;  %v3860_v11 = vpop.permute.xlu2 %2309 }
 0x283   : > { %v944_v58 = vperm.slane %v936_v6, %v3183_v27  ;;  %v888_v9 = vperm.slane %v880_v30, %v3183_v27  ;;  %v3857_v18 = vperm.slane %v1072_v12, %v3183_v27  ;;  %v1074_v42 = vsel %vm337_vm4, %v2745_v17, %v1073_v15 }
 0x284   : > { %v934_v28 = vsel %vm337_vm4, %v933_v46, %v2721_v39  ;;  %v878_v35 = vsel %vm337_vm4, %v877_v32, %v2720_v41  ;;  %v1130_v41 = vsel %vm337_vm4, %v2746_v61, %v1129_v31  ;;  %v3874_v25 = vperm.slane %v1128_v2, %v3183_v27 }
 0x285   : > { %v957_v5 = vrot.slane %v944_v58, 4  ;;  %v901_v52 = vrot.slane %v888_v9, 4  ;;  %v904_v22 = vsel %vm337_vm4, %v888_v9, %v903_v50  ;;  %v960_v24 = vsel %vm337_vm4, %v944_v58, %v959_v34 }
 0x286   : > { %v2749_v14 = vpop.permute.xlu0 %2748  ;;  %v3865_v39 = vperm.slane %v878_v35, %v3183_v27  ;;  %v3871_v7 = vperm.slane %v934_v28, %v3183_v27  ;;  %v1082_v8 = vperm.slane %v1074_v42, %v3183_v27  ;;  %v1097_v6 = vrot.slane %v3857_v18, 4 }
 0x287   : > { %v2739_v47 = vpop.permute.xlu1 %2738  ;;  %v2751_v13 = vunpack.i.h.bf16 %v2749_v14  ;;  %v2750_v59 = vunpack.i.l.bf16 %v2749_v14  ;;  %v3883_v34 = vperm.slane %v904_v22, %v3192_v44  ;;  %v3886_v50 = vperm.slane %v960_v24, %v3192_v44 }
 0x288   : > { %v2741_v23 = vunpack.i.h.bf16 %v2739_v47  ;;  %v2740_v10 = vunpack.i.l.bf16 %v2739_v47  ;;  %v902_v12 = vsel %vm337_vm4, %v901_v52, %v876_v57  ;;  %v958_v15 = vsel %vm337_vm4, %v957_v5, %v932_v43 }
 0x289   : > { %v1139_v4 = vrot.slane %v2751_v13, 4  ;;  %v1083_v1 = vrot.slane %v2750_v59, 4  ;;  %v2892_v47 = vpack.i.bf16 %v3886_v50, %v3883_v34  ;;  %v3899_v58 = vperm.slane %v902_v12, %v3192_v44 }
 0x28a   : > { %v1141_v53 = vrot.slane %v2741_v23, 4  ;;  %v1085_v21 = vrot.slane %v2740_v10, 4  ;;  %v3902_v9 = vperm.slane %v958_v15, %v3192_v44  ;;  %v948_v43 = vsel %vm337_vm4, %v3871_v7, %v947_v38 }
 0x28b   : > { %v1084_v17 = vsel %vm337_vm4, %v1083_v1, %v2740_v10  ;;  %v1140_v26 = vsel %vm337_vm4, %v1139_v4, %v2741_v23  ;;  %v892_v23 = vsel %vm337_vm4, %v3865_v39, %v891_v40  ;;  %v2776_v31 = vunpack.i.h.bf16 %v3821_v36  ;;  %2893 = vrot.lane.b32.xlu1 %v2892_v47, %s3093_s29  ;;  %v2799_v4 = vpop.permute.xlu2 %2798 }
 0x28c   : > { %v1142_v0 = vsel %vm337_vm4, %v2751_v13, %v1141_v53  ;;  %v1086_v61 = vsel %vm337_vm4, %v2750_v59, %v1085_v21  ;;  %v3892_v14 = vperm.slane %v1084_v17, %v3183_v27  ;;  %v3907_v10 = vperm.slane %v1140_v26, %v3183_v27 }
 0x28d   : > { %v1150_v32 = vperm.slane %v1142_v0, %v3183_v27  ;;  %v1094_v2 = vperm.slane %v1086_v61, %v3183_v27  ;;  %v3911_v57 = vperm.slane %v892_v23, %v3192_v44  ;;  %v1138_v13 = vperm.slane %v1130_v41, %v3183_v27 }
 0x28e   : > { %v3878_v30 = vpop.permute.xlu0 %2753  ;;  %v2887_v40 = vpack.i.bf16 %v3902_v9, %v3899_v58  ;;  %v3921_v59 = vperm.slane %v948_v43, %v3192_v44  ;;  %v1153_v28 = vrot.slane %v3874_v25, 4  ;;  %v1098_v35 = vsel %vm337_vm4, %v3892_v14, %v1097_v6 }
 0x28f   : > { %v3888_v46 = vpop.permute.xlu1 %2758  ;;  %v1109_v53 = vrot.slane %v1082_v8, 4  ;;  %v3930_v42 = vperm.slane %v1098_v35, %v3192_v44  ;;  %v2183_v21 = vrot.slane %v2775_v19, 4  ;;  %v1163_v1 = vrot.slane %v1150_v32, 4 }
 0x290   : > { %2888 = vrot.lane.b32.xlu2 %v2887_v40, %s3092_s28  ;;  %v2882_v38 = vpack.i.bf16 %v3921_v59, %v3911_v57  ;;  %v1107_v5 = vrot.slane %v1094_v2, 4  ;;  %v1154_v52 = vsel %vm337_vm4, %v3907_v10, %v1153_v28  ;;  %v2185_v24 = vrot.slane %v2776_v31, 4 }
 0x291   : > { %v1165_v41 = vrot.slane %v1138_v13, 4  ;;  %v3940_v0 = vperm.slane %v1154_v52, %v3192_v44  ;;  %v1110_v17 = vsel %vm337_vm4, %v1094_v2, %v1109_v53  ;;  %v2800_v61 = vunpack.i.l.bf16 %v2799_v4 }
 0x292   : > { %2883 = vrot.lane.b32.xlu0 %v2882_v38, %s3097_s8  ;;  %v3946_v26 = vperm.slane %v1110_v17, %v3192_v44  ;;  %v2184_v47 = vsel %vm337_vm4, %v2183_v21, %v2776_v31  ;;  %v1108_v43 = vsel %vm337_vm4, %v1107_v5, %v1082_v8  ;;  %v1164_v2 = vsel %vm337_vm4, %v1163_v1, %v1138_v13 }
 0x293   : > { %v2897_v12 = vpack.i.bf16 %v3940_v0, %v3930_v42  ;;  %v1166_v15 = vsel %vm337_vm4, %v1150_v32, %v1165_v41  ;;  %v2186_v40 = vsel %vm337_vm4, %v2775_v19, %v2185_v24  ;;  %v2801_v28 = vunpack.i.h.bf16 %v2799_v4 }
 0x294   : > { %v3953_v23 = vperm.slane %v1166_v15, %v3192_v44  ;;  %v3961_v35 = vperm.slane %v1108_v43, %v3192_v44  ;;  %v3964_v53 = vperm.slane %v1164_v2, %v3192_v44  ;;  %v5015_v31 = vunpack.i.h.bf16 %v3814_v3 }
 0x295   : > { %v2765_v8 = vunpack.i.l.bf16 %v3814_v3  ;;  %v2115_v38 = vrot.slane %v2800_v61, 4  ;;  %v3974_v19 = vperm.slane %v2184_v47, %v3183_v27  ;;  %v3977_v13 = vperm.slane %v2186_v40, %v3183_v27 }
 0x296   : > { %v3936_v22 = vpop.permute.xlu0 %2768  ;;  %v2907_v32 = vpack.i.bf16 %v3953_v23, %v3946_v26  ;;  %v2902_v36 = vpack.i.bf16 %v3964_v53, %v3961_v35  ;;  %v5013_v21 = vunpack.i.h.bf16 %v3835_v56  ;;  %v5014_v4 = vunpack.i.l.bf16 %v3835_v56 }
 0x297   : > { %v3943_v6 = vpop.permute.xlu1 %2778  ;;  %v2117_v5 = vrot.slane %v2801_v28, 4  ;;  %v945_v24 = vrot.slane %v3871_v7, 4  ;;  %v889_v41 = vrot.slane %v3865_v39, 4  ;;  %v5016_v17 = vunpack.i.l.bf16 %v3878_v30  ;;  %v4024_v39 = vpop.permute.xlu2 %2305 }
 0x298   : > { %2898 = vrot.lane.b32.xlu2 %v2897_v12, %s3097_s8  ;;  %2903 = vrot.lane.b32.xlu1 %v2902_v36, %s3092_s28  ;;  %v3992_v12 = vperm.slane %v3686_v51, %v3192_v44  ;;  %v3996_v15 = vrot.slane %v5015_v31, 4  ;;  %v3998_v47 = vrot.slane %v2765_v8, 4  ;;  %v2116_v43 = vsel %vm337_vm4, %v2115_v38, %v2801_v28 }
 0x299   : > { %v4003_v2 = vperm.slane %v3689_v29, %v3192_v44  ;;  %v4009_v51 = vrot.slane %v5013_v21, 4  ;;  %v4013_v40 = vrot.slane %v5014_v4, 4  ;;  %v4017_v28 = vsel %vm337_vm4, %v2800_v61, %v2117_v5 }
 0x29a   : > { %2908 = vrot.lane.b32.xlu0 %v2907_v32, %s3093_s29  ;;  %5052 = vst [vmem:[#allocation4_spill] sm:$0xff] %v3992_v12  ;;  %v917_v29 = vrot.slane %v3899_v58, 4  ;;  %v973_v38 = vrot.slane %v3902_v9, 4  ;;  %v4022_v36 = vperm.slane %v2116_v43, %v3183_v27  ;;  %v1494_v7 = vrot.slane %v5016_v17, 4 }
 0x29b   : > { %5053 = vst [vmem:[#allocation5_spill] sm:$0xff] %v4003_v2  ;;  %v890_v21 = vsel %vm337_vm4, %v889_v41, %v3843_v63  ;;  %v946_v32 = vsel %vm337_vm4, %v945_v24, %v3840_v60  ;;  %v1151_v43 = vrot.slane %v3907_v10, 4  ;;  %v915_v31 = vrot.slane %v3911_v57, 4 }
 0x29c   : > { %v918_v61 = vsel %vm337_vm4, 0.0, %v917_v29  ;;  %v974_v58 = vsel %vm337_vm4, 0.0, %v973_v38  ;;  %v4035_v9 = vperm.slane %v890_v21, %v3192_v44  ;;  %v4038_v5 = vperm.slane %v946_v32, %v3192_v44 }
 0x29d   : > { %v2922_v4 = vpack.i.bf16 %v974_v58, %v918_v61  ;;  %v971_v63 = vrot.slane %v3921_v59, 4  ;;  %v1095_v60 = vrot.slane %v3892_v14, 4  ;;  %v2760_v24 = vunpack.i.l.bf16 %v3888_v46 }
 0x29e   : > { %v3981_v1 = vpop.permute.xlu0 %2311  ;;  %5054 = vst [vmem:[#allocation6_spill] sm:$0xff] %v4035_v9  ;;  %v913_v29 = vrot.slane %v4035_v9, 4  ;;  %v969_v21 = vrot.slane %v4038_v5, 4  ;;  %v2756_v32 = vunpack.i.h.bf16 %v3878_v30  ;;  %v1495_v10 = vsel %vm337_vm4, %v2765_v8, %v1494_v7 }
 0x29f   : > { %v3985_v52 = vpop.permute.xlu1 %2307  ;;  %5055 = vst [vmem:[#allocation7_spill] sm:$0xff] %v4038_v5  ;;  %v916_v57 = vsel %vm337_vm4, 0.0, %v915_v31  ;;  %v972_v59 = vsel %vm337_vm4, 0.0, %v971_v63  ;;  %v1121_v17 = vrot.slane %v3930_v42, 4  ;;  %v2770_v33 = vunpack.i.l.bf16 %v3936_v22 }
 0x2a0   : > { %v914_v14 = vsel %vm337_vm4, 0.0, %v913_v29  ;;  %v970_v61 = vsel %vm337_vm4, 0.0, %v969_v21  ;;  %v2917_v58 = vpack.i.bf16 %v972_v59, %v916_v57  ;;  %v1177_v9 = vrot.slane %v3940_v0, 4 }
 0x2a1   : > { %v2912_v20 = vpack.i.bf16 %v970_v61, %v914_v14  ;;  %v919_v8 = vrot.slane %v3883_v34, 4  ;;  %v1122_v31 = vsel %vm337_vm4, 0.0, %v1121_v17  ;;  %v1096_v7 = vsel %vm337_vm4, %v1095_v60, %v3857_v18 }
 0x2a2   : > { %2923 = vrot.lane.b32.xlu0 %v2922_v4, %s3096_s7  ;;  %2918 = vrot.lane.b32.xlu1 %v2917_v58, %s3095_s6  ;;  %v975_v4 = vrot.slane %v3886_v50, 4  ;;  %v1152_v63 = vsel %vm337_vm4, %v1151_v43, %v3874_v25  ;;  %v2761_v42 = vunpack.i.h.bf16 %v3888_v46  ;;  %v1506_v29 = vrot.slane %v2760_v24, 4  ;;  %v4082_v25 = vpop.permute.xlu2 %2297 }
 0x2a3   : > { %2913 = vrot.lane.b32.xlu2 %v2912_v20, %s3098_s9  ;;  %v1178_v0 = vsel %vm337_vm4, 0.0, %v1177_v9  ;;  %v4073_v34 = vperm.slane %v1096_v7, %v3192_v44  ;;  %v1550_v21 = vrot.slane %v2756_v32, 4  ;;  %v4076_v17 = vperm.slane %v1495_v10, %v3183_v27 }
 0x2a4   : > { %v2771_v50 = vunpack.i.h.bf16 %v3936_v22  ;;  %v4080_v18 = vperm.slane %v1152_v63, %v3192_v44  ;;  %v1507_v46 = vsel %vm337_vm4, %v2770_v33, %v1506_v29  ;;  %v2937_v43 = vpack.i.bf16 %v1178_v0, %v1122_v31 }
 0x2a5   : > { %5056 = vst [vmem:[#allocation8_spill] sm:$0xff] %v4073_v34  ;;  %v1119_v20 = vrot.slane %v4073_v34, 4  ;;  %v1504_v57 = vrot.slane %v2770_v33, 4  ;;  %v920_v10 = vsel %vm337_vm4, 0.0, %v919_v8  ;;  %v976_v59 = vsel %vm337_vm4, 0.0, %v975_v4 }
 0x2a6   : > { %v4043_v41 = vpop.permute.xlu0 %2303  ;;  %5057 = vst [vmem:[#allocation9_spill] sm:$0xff] %v4080_v18  ;;  %v1175_v22 = vrot.slane %v4080_v18, 4  ;;  %v2141_v61 = vrot.slane %v4022_v36, 4  ;;  %v1562_v58 = vrot.slane %v2761_v42, 4  ;;  %v2321_v31 = vrot.slane %v4024_v39, 4 }
 0x2a7   : > { %v4049_v38 = vpop.permute.xlu1 %2793  ;;  %v1120_v7 = vsel %vm337_vm4, 0.0, %v1119_v20  ;;  %v5058_v63 = vunpack.i.l.bf16 %v3878_v30  ;;  %v1560_v8 = vrot.slane %v2771_v50, 4  ;;  %v1515_v4 = vperm.slane %v1507_v46, %v3183_v27 }
 0x2a8   : > { %v1176_v29 = vsel %vm337_vm4, 0.0, %v1175_v22  ;;  %v1563_v0 = vsel %vm337_vm4, %v2771_v50, %v1562_v58  ;;  %v2927_v9 = vpack.i.bf16 %v976_v59, %v920_v10  ;;  %v5059_v18 = vunpack.i.h.bf16 %v4049_v38 }
 0x2a9   : > { %v1493_v33 = vsel %vm337_vm4, %v3998_v47, %v5058_v63  ;;  %v2932_v34 = vpack.i.bf16 %v1176_v29, %v1120_v7  ;;  %v1549_v30 = vsel %vm337_vm4, %v3996_v15, %v2756_v32  ;;  %v5060_v20 = vunpack.i.h.bf16 %v3814_v3 }
 0x2aa   : > { %2938 = vrot.lane.b32.xlu0 %v2937_v43, %s3095_s6  ;;  %v2128_v43 = vsel %vm337_vm4, %v4009_v51, %v5059_v18  ;;  %v1505_v46 = vsel %vm337_vm4, %v1504_v57, %v2760_v24  ;;  %v1530_v22 = vrot.slane %v4076_v17, 4  ;;  %v4117_v50 = vperm.slane %v1493_v33, %v3183_v27 }
 0x2ab   : > { %v1551_v47 = vsel %vm337_vm4, %v5060_v20, %v1550_v21  ;;  %2928 = vrot.lane.b32.xlu2 %v2927_v9, %s3094_s30  ;;  %2933 = vrot.lane.b32.xlu1 %v2932_v34, %s3098_s9  ;;  %v1123_v51 = vrot.slane %v3961_v35, 4  ;;  %v1179_v18 = vrot.slane %v3964_v53, 4  ;;  %v1125_v15 = vrot.slane %v3946_v26, 4 }
 0x2ac   : > { %v1561_v3 = vsel %vm337_vm4, %v1560_v8, %v2761_v42  ;;  %v4126_v32 = vperm.slane %v1563_v0, %v3183_v27  ;;  %v4129_v24 = vperm.slane %v2128_v43, %v3183_v27  ;;  %v1531_v21 = vsel %vm337_vm4, %v1515_v4, %v1530_v22  ;;  %v4157_v8 = vpop.permute.xlu2 %2823 }
 0x2ad   : > { %v4133_v9 = vperm.slane %v1549_v30, %v3183_v27  ;;  %v2781_v34 = vunpack.i.h.bf16 %v3943_v6  ;;  %v4137_v35 = vperm.slane %v1505_v46, %v3183_v27  ;;  %v4140_v26 = vperm.slane %v1531_v21, %v3192_v44  ;;  %5063 = vst [vmem:[#allocation12_spill] sm:$0xff] %v4157_v8 }
 0x2ae   : > { %v4087_v60 = vpop.permute.xlu0 %2788  ;;  %v1124_v42 = vsel %vm337_vm4, 0.0, %v1123_v51  ;;  %v1180_v57 = vsel %vm337_vm4, 0.0, %v1179_v18  ;;  %v1126_v10 = vsel %vm337_vm4, 0.0, %v1125_v15  ;;  %v1181_v59 = vrot.slane %v3953_v23, 4 }
 0x2af   : > { %v4092_v14 = vpop.permute.xlu1 %2301  ;;  %5061 = vst [vmem:[#allocation10_spill] sm:$0xff] %v4133_v9  ;;  %v4151_v7 = vperm.slane %v1551_v47, %v3183_v27  ;;  %v1518_v63 = vrot.slane %v4117_v50, 4  ;;  %v4155_v33 = vperm.slane %v1561_v3, %v3183_v27  ;;  %v2795_v29 = vunpack.i.l.bf16 %v4049_v38 }
 0x2b0   : > { %5062 = vst [vmem:[#allocation11_spill] sm:$0xff] %v4140_v26  ;;  %v1584_v0 = vrot.slane %v4126_v32, 4  ;;  %v1528_v23 = vrot.slane %v1515_v4, 4  ;;  %v1182_v43 = vsel %vm337_vm4, 0.0, %v1181_v59  ;;  %v2142_v30 = vsel %vm337_vm4, %v4129_v24, %v2141_v61 }
 0x2b1   : > { %v1574_v20 = vrot.slane %v4133_v9, 4  ;;  %v2942_v47 = vpack.i.bf16 %v1180_v57, %v1124_v42  ;;  %v2947_v46 = vpack.i.bf16 %v1182_v43, %v1126_v10  ;;  %v4168_v22 = vperm.slane %v2142_v30, %v3192_v44 }
 0x2b2   : > { %1625 = vrot.lane.b32.xlu0 %v4140_v26, %s3093_s29  ;;  %v1768_v51 = vrot.slane %v2781_v34, 4  ;;  %v2780_v18 = vunpack.i.l.bf16 %v3943_v6  ;;  %v4173_v15 = vsel %vm337_vm4, %v2321_v31, %v4082_v25  ;;  %v1519_v4 = vsel %vm337_vm4, %v4137_v35, %v1518_v63 }
 0x2b3   : > { %5064 = vst [vmem:[#allocation13_spill] sm:$0xff] %v4168_v22  ;;  %v2377_v61 = vrot.slane %v3985_v52, 4  ;;  %v2172_v21 = vsel %vm337_vm4, %v4013_v40, %v2795_v29  ;;  %2943 = vrot.lane.b32.xlu2 %v2942_v47, %s3096_s7  ;;  %2948 = vrot.lane.b32.xlu1 %v2947_v46, %s3094_s30  ;;  %v1575_v6 = vsel %vm337_vm4, %v4155_v33, %v1574_v20  ;;  %v5068_v46 = vunpack.i.l.bf16 %v3835_v56 }
 0x2b4   : > { %v2967_v31 = vpack.i.bf16 %v4168_v22, %v3992_v12  ;;  %v4188_v42 = vperm.slane %v1519_v4, %v3192_v44  ;;  %v1529_v57 = vsel %vm337_vm4, %v1528_v23, %v4076_v17  ;;  %v1585_v10 = vsel %vm337_vm4, %v1584_v0, %v4151_v7  ;;  %v4224_v3 = vpop.permute.xlu2 %2833 }
 0x2b5   : > { %v4195_v40 = vperm.slane %v1575_v6, %v3192_v44  ;;  %v4198_v59 = vperm.slane %v1529_v57, %v3192_v44  ;;  %v4201_v63 = vperm.slane %v1585_v10, %v3192_v44  ;;  %v1766_v20 = vrot.slane %v2780_v18, 4 }
 0x2b6   : > { %v4142_v53 = vpop.permute.xlu0 %2299  ;;  %v1769_v47 = vsel %vm337_vm4, %v2780_v18, %v1768_v51  ;;  %v2389_v17 = vrot.slane %v3981_v1, 4  ;;  %v2173_v23 = vrot.slane %v2795_v29, 4  ;;  %v4218_v10 = vperm.slane %v2172_v21, %v3183_v27 }
 0x2b7   : > { %v4148_v58 = vpop.permute.xlu1 %2808  ;;  %5065 = vst [vmem:[#allocation14_spill] sm:$0xff] %v4198_v59  ;;  %v2378_v57 = vsel %vm337_vm4, %v2377_v61, %v4142_v53  ;;  %v2391_v51 = vrot.slane %v4043_v41, 4  ;;  %v2790_v18 = vunpack.i.l.bf16 %v4087_v60  ;;  %v2379_v5 = vrot.slane %v4142_v53, 4 }
 0x2b8   : > { %5066 = vst [vmem:[#allocation15_spill] sm:$0xff] %v4201_v63  ;;  %v5021_v43 = vunpack.i.l.bf16 %v4148_v58  ;;  %v5026_v4 = vunpack.i.h.bf16 %v4148_v58  ;;  %v2390_v29 = vsel %vm337_vm4, %v2389_v17, %v4043_v41  ;;  %v4234_v21 = vperm.slane %v2378_v57, %v3183_v27 }
 0x2b9   : > { %v1767_v17 = vsel %vm337_vm4, %v1766_v20, %v2781_v34  ;;  %v4238_v41 = vperm.slane %v1769_v47, %v3183_v27  ;;  %v2174_v12 = vsel %vm337_vm4, %v5068_v46, %v2173_v23  ;;  %v4245_v22 = vperm.slane %v2390_v29, %v3183_v27 }
 0x2ba   : > { %2968 = vrot.lane.b32.xlu0 %v2967_v31, %s3097_s8  ;;  %v1698_v6 = vrot.slane %v5021_v43, 4  ;;  %v2952_v31 = vpack.i.bf16 %v4195_v40, %v4188_v42  ;;  %v2957_v43 = vpack.i.bf16 %v4201_v63, %v4198_v59  ;;  %5067 = vst [vmem:[#allocation16_spill] sm:$0xff] %v4234_v21  ;;  %v5070_v26 = vunpack.i.h.bf16 %v4087_v60 }
 0x2bb   : > { %5069 = vst [vmem:[#allocation17_spill] sm:$0xff] %v4245_v22  ;;  %v2403_v34 = vrot.slane %v4234_v21, 4  ;;  %v2392_v47 = vsel %vm337_vm4, %v3981_v1, %v2391_v51  ;;  %v1754_v23 = vrot.slane %v2790_v18, 4  ;;  %v5071_v57 = vunpack.i.h.bf16 %v4049_v38 }
 0x2bc   : > { %v1699_v61 = vsel %vm337_vm4, %v1698_v6, %v5026_v4  ;;  %v1710_v6 = vrot.slane %v5070_v26, 4  ;;  %2953 = vrot.lane.b32.xlu2 %v2952_v31, %s3097_s8  ;;  %2958 = vrot.lane.b32.xlu1 %v2957_v43, %s3092_s28  ;;  %v2197_v29 = vrot.slane %v4218_v10, 4  ;;  %v2380_v1 = vsel %vm337_vm4, %v3985_v52, %v2379_v5 }
 0x2bd   : > { %v4256_v53 = vperm.slane %v1699_v61, %v3183_v27  ;;  %v2129_v26 = vrot.slane %v5071_v57, 4  ;;  %v2404_v31 = vsel %vm337_vm4, %v4245_v22, %v2403_v34  ;;  %v4276_v57 = vperm.slane %v2174_v12, %v3183_v27 }
 0x2be   : > { %v4204_v30 = vpop.permute.xlu0 %2803  ;;  %v2400_v8 = vperm.slane %v2392_v47, %v3183_v27  ;;  %v4283_v34 = vperm.slane %v2404_v31, %v3192_v44  ;;  %v1790_v52 = vrot.slane %v4238_v41, 4  ;;  %v2836_v12 = vunpack.i.h.bf16 %v4224_v3 }
 0x2bf   : > { %v4208_v0 = vpop.permute.xlu1 %2813  ;;  %v5028_v20 = vunpack.i.h.bf16 %v4204_v30  ;;  %v2805_v46 = vunpack.i.l.bf16 %v4204_v30  ;;  %v1724_v5 = vrot.slane %v4256_v53, 4  ;;  %v2388_v47 = vperm.slane %v2380_v1, %v3183_v27  ;;  %v4306_v1 = vpop.permute.xlu2 %2853 }
 0x2c0   : > { %5073 = vst [vmem:[#allocation19_spill] sm:$0xff] %v4283_v34  ;;  %v2198_v31 = vsel %vm337_vm4, %v3974_v19, %v2197_v29  ;;  %v2815_v9 = vunpack.i.l.bf16 %v4208_v0 }
 0x2c1   : > { %v1711_v43 = vsel %vm337_vm4, %v1710_v6, %v5028_v20  ;;  %v1755_v38 = vsel %vm337_vm4, %v1754_v23, %v2805_v46  ;;  %v1756_v61 = vrot.slane %v2805_v46, 4  ;;  %v4286_v20 = vperm.slane %v1767_v17, %v3183_v27 }
 0x2c2   : > { %v4272_v51 = vperm.slane %v1711_v43, %v3183_v27  ;;  %v4280_v6 = vperm.slane %v1755_v38, %v3183_v27  ;;  %v5075_v17 = vunpack.i.h.bf16 %v3835_v56 }
 0x2c3   : > { %v1757_v23 = vsel %vm337_vm4, %v2790_v18, %v1756_v61  ;;  %v2209_v61 = vrot.slane %v4276_v57, 4 }
 0x2c4   : > { %v1780_v43 = vrot.slane %v4280_v6, 4  ;;  %v2130_v38 = vsel %vm337_vm4, %v5075_v17, %v2129_v26  ;;  %v1765_v21 = vperm.slane %v1757_v23, %v3183_v27  ;;  %v1725_v18 = vsel %vm337_vm4, %v4272_v51, %v1724_v5  ;;  %2466 = vrot.lane.b32.xlu2 %v4283_v34, %s3097_s8 }
 0x2c5   : > { %v4311_v29 = vperm.slane %v1725_v18, %v3192_v44  ;;  %v4320_v5 = vperm.slane %v2198_v31, %v3192_v44  ;;  %v2415_v23 = vrot.slane %v2388_v47, 4 }
 0x2c6   : > { %v4267_v4 = vpop.permute.xlu0 %2818  ;;  %v1781_v56 = vsel %vm337_vm4, %v4286_v20, %v1780_v43  ;;  %v1792_v34 = vrot.slane %v1765_v21, 4 }
 0x2c7   : > { %5072 = vst [vmem:[#allocation18_spill] sm:$0xff] %v4267_v4  ;;  %v4291_v46 = vpop.permute.xlu1 %2838  ;;  %v2835_v4 = vunpack.i.l.bf16 %v4224_v3  ;;  %v2335_v3 = vrot.slane %v4092_v14, 4  ;;  %v4317_v26 = vperm.slane %v1781_v56, %v3192_v44  ;;  %v2977_v22 = vpack.i.bf16 %v4003_v2, %v4311_v29 }
 0x2c8   : > { %5074 = vst [vmem:[#allocation20_spill] sm:$0xff] %v4291_v46  ;;  %v2413_v46 = vrot.slane %v2400_v8, 4  ;;  %v2816_v56 = vunpack.i.h.bf16 %v4208_v0 }
 0x2c9   : > { %v2962_v43 = vpack.i.bf16 %v4317_v26, %v4320_v5  ;;  %2978 = vrot.lane.b32.xlu0 %v2977_v22, %s3097_s8 }
 0x2ca   : > { %v2414_v17 = vsel %vm337_vm4, %v2413_v46, %v2388_v47  ;;  %v1791_v46 = vsel %vm337_vm4, %v1790_v52, %v1765_v21  ;;  %v2336_v47 = vsel %vm337_vm4, %v3860_v11, %v2335_v3  ;;  %v2416_v21 = vsel %vm337_vm4, %v2400_v8, %v2415_v23 }
 0x2cb   : > { %v4334_v31 = vperm.slane %v2414_v17, %v3192_v44  ;;  %2963 = vrot.lane.b32.xlu1 %v2962_v43, %s3097_s8  ;;  %v5076_v52 = vrot.slane %v3977_v13, 4  ;;  %v5077_v8 = vrot.slane %v4082_v25, 4 }
 0x2cd   : > { %v2208_v3 = vsel %vm337_vm4, %v5076_v52, %v4276_v57  ;;  %2474 = vrot.lane.b32.xlu2 %v4334_v31, %s3092_s28  ;;  %v4381_v57 = vperm.slane %v2336_v47, %v3183_v27 }
 0x2ce   : > { %v2829_v18 = vpop.permute.xlu0 %2828  ;;  %v4386_v25 = vperm.slane %v2208_v3, %v3192_v44  ;;  %v5081_v3 = vunpack.i.h.bf16 %v4087_v60 }
 0x2cf   : > { %v2831_v63 = vunpack.i.h.bf16 %v2829_v18  ;;  %v2830_v59 = vunpack.i.l.bf16 %v2829_v18  ;;  %v4348_v17 = vpop.permute.xlu1 %2858 }
 0x2d1   : > { %v826_v18 = vsel %vm812_vm10, %v3762_v55, %v2831_v63  ;;  %v813_v2 = vsel %vm812_vm10, %v3766_v45, %v2830_v59  ;;  %v1793_v45 = vsel %vm337_vm4, %v4238_v41, %v1792_v34  ;;  %v2324_v59 = vsel %vm337_vm4, %v4024_v39, %v5077_v8  ;;  %v2864_v34 = vpop.permute.xlu2 %2863 }
 0x2d2   : > { %v827_v0 = vsel %vm814_vm11, %v826_v18, %v2816_v56  ;;  %v815_v22 = vsel %vm814_vm11, %v813_v2, %v2815_v9  ;;  %v4359_v2 = vperm.slane %v1791_v46, %v3192_v44  ;;  %v4363_v9 = vperm.slane %v4017_v28, %v3183_v27 }
 0x2d3   : > { %v4351_v43 = vsel %vm816_vm12, %v827_v0, %v2836_v12  ;;  %v4354_v55 = vsel %vm816_vm12, %v815_v22, %v2835_v4  ;;  %v4371_v63 = vperm.slane %v4173_v15, %v3183_v27  ;;  %v5078_v4 = vrot.slane %v3860_v11, 4 }
 0x2d4   : > { %v2138_v28 = vperm.slane %v2130_v38, %v3183_v27  ;;  %v2210_v39 = vsel %vm337_vm4, %v3977_v13, %v2209_v61  ;;  %v1778_v15 = vrot.slane %v4286_v20, 4  ;;  %v5079_v11 = vunpack.i.h.bf16 %v4204_v30 }
 0x2d5   : > { %v2334_v41 = vsel %vm337_vm4, %v5078_v4, %v4092_v14  ;;  %v4392_v12 = vperm.slane %v1793_v45, %v3192_v44  ;;  %v4395_v38 = vperm.slane %v2416_v21, %v3192_v44  ;;  %v2972_v13 = vpack.i.bf16 %v4359_v2, %v4386_v25 }
 0x2d6   : > { %v1712_v14 = vrot.slane %v5079_v11, 4  ;;  %v4397_v23 = vpop.permute.xlu0 %2843  ;;  %v4400_v56 = vperm.slane %v2334_v41, %v3183_v27  ;;  %v1542_v20 = vrot.slane %v4188_v42, 4  ;;  %v1598_v61 = vrot.slane %v4195_v40, 4 }
 0x2d7   : > { %v4407_v30 = vperm.slane %v2324_v59, %v3183_v27  ;;  %v2347_v46 = vrot.slane %v4371_v63, 4  ;;  %v4411_v47 = vperm.slane %v2210_v39, %v3192_v44  ;;  %2482 = vrot.lane.b32.xlu0 %v4395_v38, %s3093_s29  ;;  %v1779_v18 = vsel %vm337_vm4, %v1778_v15, %v4280_v6  ;;  %2973 = vrot.lane.b32.xlu1 %v2972_v13, %s3092_s28 }
 0x2d8   : > { %v2151_v0 = vrot.slane %v2138_v28, 4  ;;  %v2357_v22 = vrot.slane %v4381_v57, 4  ;;  %v5080_v42 = vunpack.i.h.bf16 %v4148_v58  ;;  %v2866_v21 = vunpack.i.h.bf16 %v2864_v34 }
 0x2d9   : > { %v2865_v52 = vunpack.i.l.bf16 %v2864_v34  ;;  %v1713_v45 = vsel %vm337_vm4, %v5081_v3, %v1712_v14  ;;  %v2987_v8 = vpack.i.bf16 %v4392_v12, %v4411_v47  ;;  %v5082_v6 = vrot.slane %v3974_v19, 4 }
 0x2da   : > { %v1700_v40 = vrot.slane %v5080_v42, 4  ;;  %v1543_v4 = vsel %vm337_vm4, 0.0, %v1542_v20  ;;  %v1599_v41 = vsel %vm337_vm4, 0.0, %v1598_v61  ;;  %v2348_v39 = vsel %vm337_vm4, %v4400_v56, %v2347_v46  ;;  %v2869_v20 = vpop.permute.xlu1 %2868 }
 0x2db   : > { %v2196_v59 = vsel %vm337_vm4, %v5082_v6, %v4218_v10  ;;  %v4435_v15 = vperm.slane %v1779_v18, %v3192_v44  ;;  %v2153_v60 = vrot.slane %v4363_v9, 4  ;;  %v2139_v34 = vrot.slane %v4129_v24, 4  ;;  %2988 = vrot.lane.b32.xlu2 %v2987_v8, %s3093_s29 }
 0x2dc   : > { %v2856_v11 = vunpack.i.h.bf16 %v4306_v1  ;;  %v2855_v19 = vunpack.i.l.bf16 %v4306_v1  ;;  %v5083_v10 = vunpack.i.l.bf16 %v4148_v58  ;;  %v1461_v13 = vsel %vm812_vm10, %v3758_v54, %v2866_v21 }
 0x2dd   : > { %v2358_v61 = vsel %vm337_vm4, %v2357_v22, %v4407_v30  ;;  %v4450_v46 = vperm.slane %v2196_v59, %v3192_v44  ;;  %v1454_v24 = vsel %vm812_vm10, %v3754_v62, %v2865_v52  ;;  %v1721_v1 = vperm.slane %v1713_v45, %v3183_v27 }
 0x2de   : > { %v1701_v14 = vsel %vm337_vm4, %v5083_v10, %v1700_v40  ;;  %v3012_v18 = vpack.i.bf16 %v1599_v41, %v1543_v4  ;;  %v4456_v58 = vperm.slane %v2348_v39, %v3192_v44  ;;  %v2849_v42 = vpop.permute.xlu0 %2848  ;;  %v1802_v54 = vrot.slane %v4435_v15, 4 }
 0x2df   : > { %v2851_v40 = vunpack.i.h.bf16 %v2849_v42  ;;  %v2850_v3 = vunpack.i.l.bf16 %v2849_v42  ;;  %v2152_v22 = vsel %vm337_vm4, %v2151_v0, %v4363_v9  ;;  %v2871_v21 = vunpack.i.h.bf16 %v2869_v20 }
 0x2e0   : > { %v2870_v8 = vunpack.i.l.bf16 %v2869_v20  ;;  %v4462_v6 = vperm.slane %v2358_v61, %v3192_v44  ;;  %3013 = vrot.lane.b32.xlu0 %v3012_v18, %s3095_s6  ;;  %v2140_v62 = vsel %vm337_vm4, %v2139_v34, %v4022_v36  ;;  %2438 = vrot.lane.b32.xlu1 %v4456_v58, %s3097_s8  ;;  %v2154_v59 = vsel %vm337_vm4, %v2138_v28, %v2153_v60 }
 0x2e1   : > { %v1462_v52 = vsel %vm814_vm11, %v1461_v13, %v2851_v40  ;;  %v1455_v45 = vsel %vm814_vm11, %v1454_v24, %v2850_v3  ;;  %v2219_v9 = vrot.slane %v4450_v46, 4  ;;  %v4476_v41 = vperm.slane %v2152_v22, %v3192_v44  ;;  %v4513_v3 = vpop.permute.xlu2 %2878 }
 0x2e2   : > { %v1463_v0 = vsel %vm816_vm12, %v1462_v52, %v2871_v21  ;;  %v1456_v4 = vsel %vm816_vm12, %v1455_v45, %v2870_v8  ;;  %v1803_v36 = vsel %vm337_vm4, 0.0, %v1802_v54  ;;  %v4480_v39 = vperm.slane %v2140_v62, %v3192_v44 }
 0x2e3   : > { %v1457_v34 = vsel %vm818_vm13, %v1456_v4, %v2855_v19  ;;  %v1464_v10 = vsel %vm818_vm13, %v1463_v0, %v2856_v11  ;;  %v1734_v28 = vrot.slane %v1721_v1, 4  ;;  %2446 = vrot.lane.b32.xlu2 %v4462_v6, %s3092_s28  ;;  %v4488_v60 = vperm.slane %v3711_v37, %v3192_v44 }
 0x2e4   : > { %v1709_v13 = vperm.slane %v1701_v14, %v3183_v27  ;;  %v2220_v20 = vsel %vm337_vm4, 0.0, %v2219_v9  ;;  %v4494_v61 = vperm.slane %v3705_v49, %v3192_v44  ;;  %v4497_v19 = vperm.slane %v2154_v59, %v3192_v44 }
 0x2e5   : > { %v3022_v11 = vpack.i.bf16 %v1803_v36, %v2220_v20  ;;  %v2163_v37 = vrot.slane %v4480_v39, 4  ;;  %v4506_v27 = vperm.slane %v3708_v16, %v3192_v44  ;;  %v2013_v49 = vrot.slane %v4488_v60, 4 }
 0x2e6   : > { %v4499_v24 = vpop.permute.xlu0 %2042  ;;  %v2982_v18 = vpack.i.bf16 %v4476_v41, %v4494_v61  ;;  %v1735_v14 = vsel %vm337_vm4, %v1734_v28, %v1709_v13  ;;  %v1736_v42 = vrot.slane %v1709_v13, 4  ;;  %v1722_v40 = vrot.slane %v4272_v51, 4  ;;  %v5084_v13 = vld [vmem:[#allocation10_spill] sm:$0xff] }
 0x2e7   : > { %v2997_v54 = vpack.i.bf16 %v4497_v19, %v4506_v27  ;;  %v1586_v22 = vrot.slane %v4151_v7, 4  ;;  %v2164_v21 = vsel %vm337_vm4, 0.0, %v2163_v37  ;;  %v4521_v8 = vperm.slane %v1735_v14, %v3192_v44 }
 0x2e8   : > { %3023 = vrot.lane.b32.xlu0 %v3022_v11, %s3098_s9  ;;  %2983 = vrot.lane.b32.xlu1 %v2982_v18, %s3092_s28  ;;  %v1737_v16 = vsel %vm337_vm4, %v1721_v1, %v1736_v42  ;;  %v2014_v51 = vsel %vm337_vm4, 0.0, %v2013_v49  ;;  %v4527_v62 = vperm.slane %v3702_v48, %v3192_v44  ;;  %v1572_v52 = vrot.slane %v4155_v33, 4  ;;  %v5085_v18 = vld [vmem:[#allocation14_spill] sm:$0xff]  ;;  %v5086_v49 = vld [vmem:[#allocation15_spill] sm:$0xff] }
 0x2e9   : > { %v1516_v45 = vrot.slane %v4137_v35, 4  ;;  %v1587_v7 = vsel %vm337_vm4, %v4126_v32, %v1586_v22  ;;  %v4535_v1 = vsel %vm337_vm4, %v1722_v40, %v4256_v53  ;;  %v4538_v59 = vperm.slane %v1737_v16, %v3192_v44  ;;  %v5088_v22 = vld [vmem:[#allocation17_spill] sm:$0xff] }
 0x2ea   : > { %v3027_v9 = vpack.i.bf16 %v2164_v21, %v2014_v51  ;;  %v2992_v48 = vpack.i.bf16 %v4527_v62, %v4521_v8  ;;  %v2359_v33 = vrot.slane %v4407_v30, 4  ;;  %v4544_v35 = vperm.slane %v1587_v7, %v3192_v44  ;;  %v4558_v20 = vpop.permute.xlu2 %2888 }
 0x2eb   : > { %2998 = vrot.lane.b32.xlu2 %v2997_v54, %s3093_s29  ;;  %v1517_v28 = vsel %vm337_vm4, %v1516_v45, %v4117_v50  ;;  %v1573_v30 = vsel %vm337_vm4, %v1572_v52, %v5084_v13  ;;  %v1544_v37 = vrot.slane %v5085_v18, 4  ;;  %v1600_v14 = vrot.slane %v5086_v49, 4  ;;  %v5089_v45 = vld [vmem:[#allocation16_spill] sm:$0xff] }
 0x2ec   : > { %v3002_v11 = vpack.i.bf16 %v4538_v59, %v4544_v35  ;;  %v2225_v40 = vrot.slane %v4411_v47, 4  ;;  %v4570_v50 = vperm.slane %v1517_v28, %v3192_v44  ;;  %v4573_v54 = vperm.slane %v1573_v30, %v3192_v44  ;;  %v5090_v28 = vld [vmem:[#allocation12_spill] sm:$0xff] }
 0x2ed   : > { %v2401_v16 = vrot.slane %v5088_v22, 4  ;;  %v1808_v21 = vrot.slane %v4392_v12, 4  ;;  %v1545_v51 = vsel %vm337_vm4, 0.0, %v1544_v37  ;;  %v1601_v52 = vsel %vm337_vm4, 0.0, %v1600_v14  ;;  %v5091_v37 = vld [vmem:[#allocation20_spill] sm:$0xff] }
 0x2ee   : > { %v2874_v0 = vpop.permute.xlu0 %2873  ;;  %v1540_v12 = vrot.slane %v4570_v50, 4  ;;  %v2826_v13 = vunpack.i.h.bf16 %v5090_v28  ;;  %v3017_v30 = vpack.i.bf16 %v1601_v52, %v1545_v51  ;;  %v2825_v18 = vunpack.i.l.bf16 %v5090_v28 }
 0x2ef   : > { %v2876_v4 = vunpack.i.h.bf16 %v2874_v0  ;;  %v2875_v36 = vunpack.i.l.bf16 %v2874_v0  ;;  %v2402_v7 = vsel %vm337_vm4, %v2401_v16, %v5089_v45  ;;  %v4587_v0 = vsel %vm337_vm4, 0.0, %v1808_v21 }
 0x2f0   : > { %3028 = vrot.lane.b32.xlu0 %v3027_v9, %s3098_s9  ;;  %2993 = vrot.lane.b32.xlu1 %v2992_v48, %s3092_s28  ;;  %v1806_v9 = vrot.slane %v4359_v2, 4  ;;  %v4590_v48 = vsel %vm337_vm4, 0.0, %v2225_v40  ;;  %v2223_v2 = vrot.slane %v4386_v25, 4  ;;  %v2841_v49 = vunpack.i.h.bf16 %v5091_v37 }
 0x2f1   : > { %v4549_v32 = vsel %vm820_vm14, %v1457_v34, %v2875_v36  ;;  %v4552_v53 = vsel %vm820_vm14, %v1464_v10, %v2876_v4  ;;  %v5087_v34 = vld [vmem:[#allocation19_spill] sm:$0xff]  ;;  %v2360_v10 = vsel %vm337_vm4, %v4381_v57, %v2359_v33  ;;  %v1596_v4 = vrot.slane %v4573_v54, 4 }
 0x2f2   : > { %v2427_v42 = vrot.slane %v5087_v34, 4  ;;  %v4581_v47 = vperm.slane %v2360_v10, %v3192_v44  ;;  %v3062_v36 = vpack.i.bf16 %v4587_v0, %v4590_v48  ;;  %v2345_v33 = vrot.slane %v4400_v56, 4  ;;  %v5092_v56 = vld [vmem:[#allocation18_spill] sm:$0xff]  ;;  %v4611_v40 = vpop.permute.xlu2 %2898 }
 0x2f3   : > { %3003 = vrot.lane.b32.xlu2 %v3002_v11, %s3093_s29  ;;  %v4603_v11 = vperm.slane %v2402_v7, %v3192_v44  ;;  %v2840_v14 = vunpack.i.l.bf16 %v5091_v37  ;;  %v1807_v34 = vsel %vm337_vm4, 0.0, %v1806_v9  ;;  %v2820_v10 = vunpack.i.l.bf16 %v5092_v56 }
 0x2f4   : > { %v2428_v57 = vsel %vm337_vm4, 0.0, %v2427_v42  ;;  %v2821_v42 = vunpack.i.h.bf16 %v5092_v56  ;;  %v1541_v25 = vsel %vm337_vm4, 0.0, %v1540_v12  ;;  %v1597_v22 = vsel %vm337_vm4, 0.0, %v1596_v4 }
 0x2f5   : > { %v2846_v16 = vunpack.i.h.bf16 %v4397_v23  ;;  %v2845_v21 = vunpack.i.l.bf16 %v4397_v23  ;;  %v2224_v51 = vsel %vm337_vm4, 0.0, %v2223_v2  ;;  %v2346_v52 = vsel %vm337_vm4, %v2345_v33, %v4371_v63 }
 0x2f6   : > { %v3047_v45 = vpack.i.bf16 %v1807_v34, %v2224_v51  ;;  %v829_v7 = vsel %vm818_vm13, %v4351_v43, %v2821_v42  ;;  %v819_v9 = vsel %vm818_vm13, %v4354_v55, %v2820_v10  ;;  %v3007_v12 = vpack.i.bf16 %v1597_v22, %v1541_v25  ;;  %v5094_v51 = vld [vmem:[#allocation13_spill] sm:$0xff] }
 0x2f7   : > { %v830_v4 = vsel %vm820_vm14, %v829_v7, %v2841_v49  ;;  %v821_v23 = vsel %vm820_vm14, %v819_v9, %v2840_v14  ;;  %v4633_v33 = vperm.slane %v2346_v52, %v3192_v44  ;;  %v2371_v55 = vrot.slane %v4456_v58, 4  ;;  %v5096_v7 = vld [vmem:[#allocation6_spill] sm:$0xff] }
 0x2f8   : > { %2470 = vrot.lane.b32.xlu0 %v2428_v57, %s3095_s6  ;;  %2454 = vrot.lane.b32.xlu1 %v4581_v47, %s3093_s29  ;;  %v2425_v57 = vrot.slane %v4603_v11, 4  ;;  %v831_v2 = vsel %vm822_vm15, %v830_v4, %v2826_v13  ;;  %v823_v63 = vsel %vm822_vm15, %v821_v23, %v2825_v18  ;;  %v5093_v13 = vld [vmem:[#allocation11_spill] sm:$0xff]  ;;  %v2167_v42 = vrot.slane %v4476_v41, 4 }
 0x2f9   : > { %v4638_v28 = vsel %vm824_vm1, %v831_v2, %v2846_v16  ;;  %v1546_v18 = vrot.slane %v5093_v13, 4  ;;  %v2369_v49 = vrot.slane %v4633_v33, 4  ;;  %v2372_v56 = vsel %vm337_vm4, 0.0, %v2371_v55 }
 0x2fa   : > { %v2426_v43 = vsel %vm337_vm4, 0.0, %v2425_v57  ;;  %v1804_v10 = vrot.slane %v4317_v26, 4  ;;  %v2017_v22 = vrot.slane %v4494_v61, 4  ;;  %v2165_v52 = vrot.slane %v5094_v51, 4  ;;  %v5099_v51 = vld [vmem:[#allocation5_spill] sm:$0xff] }
 0x2fb   : > { %3018 = vrot.lane.b32.xlu2 %v3017_v30, %s3096_s7  ;;  %v4641_v30 = vsel %vm824_vm1, %v823_v63, %v2845_v21  ;;  %v1547_v58 = vsel %vm337_vm4, 0.0, %v1546_v18  ;;  %v2221_v57 = vrot.slane %v4320_v5, 4  ;;  %v2370_v26 = vsel %vm337_vm4, 0.0, %v2369_v49  ;;  %v5097_v63 = vld [vmem:[#allocation4_spill] sm:$0xff]  ;;  %v5098_v49 = vld [vmem:[#allocation2_spill] sm:$0xff] }
 0x2fc   : > { %v2168_v4 = vsel %vm337_vm4, 0.0, %v2167_v42  ;;  %v1805_v5 = vsel %vm337_vm4, 0.0, %v1804_v10  ;;  %v4669_v2 = vperm.slane %v4535_v1, %v3192_v44  ;;  %v2018_v55 = vsel %vm337_vm4, 0.0, %v2017_v22 }
 0x2fd   : > { %v2914_v37 = vpop.permute.xlu2 %2913  ;;  %v3057_v18 = vpack.i.bf16 %v2168_v4, %v2018_v55  ;;  %v2861_v4 = vunpack.i.h.bf16 %v4348_v17 }
 0x2fe   : > { %v2916_v14 = vunpack.i.h.bf16 %v2914_v37  ;;  %v2915_v34 = vunpack.i.l.bf16 %v2914_v37  ;;  %v2222_v37 = vsel %vm337_vm4, 0.0, %v2221_v57  ;;  %v1746_v1 = vrot.slane %v4669_v2, 4 }
 0x300   : > { %3048 = vrot.lane.b32.xlu0 %v3047_v45, %s3096_s7  ;;  %3008 = vrot.lane.b32.xlu1 %v3007_v12, %s3098_s9  ;;  %v5095_v45 = vld [vmem:[#allocation7_spill] sm:$0xff]  ;;  %v1033_v9 = vsel %vm812_vm10, %v5096_v7, %v2915_v34  ;;  %v4659_v12 = vpop.permute.xlu1 %2893  ;;  %v2166_v34 = vsel %vm337_vm4, 0.0, %v2165_v52  ;;  %v1959_v52 = vrot.slane %v5099_v51, 4 }
 0x301   : > { %v1040_v41 = vsel %vm812_vm10, %v5095_v45, %v2916_v14  ;;  %v4678_v14 = vperm.slane %v5098_v49, %v3192_v44  ;;  %v1748_v44 = vrot.slane %v4311_v29, 4  ;;  %v2019_v29 = vrot.slane %v4506_v27, 4 }
 0x302   : > { %v2429_v27 = vrot.slane %v4334_v31, 4  ;;  %v1466_v49 = vsel %vm822_vm15, %v4552_v53, %v2861_v4  ;;  %v2891_v53 = vunpack.i.h.bf16 %v4558_v20 }
 0x303   : > { %2462 = vrot.lane.b32.xlu2 %v2426_v43, %s3098_s9  ;;  %v2015_v43 = vrot.slane %v5097_v63, 4  ;;  %v1749_v7 = vsel %vm337_vm4, 0.0, %v1748_v44 }
 0x304   : > { %v2884_v25 = vpop.permute.xlu0 %2883 }
 0x305   : > { %v2886_v16 = vunpack.i.h.bf16 %v2884_v25  ;;  %v2885_v21 = vunpack.i.l.bf16 %v2884_v25  ;;  %v4673_v13 = vpop.permute.xlu2 %2928  ;;  %v1957_v25 = vrot.slane %v4678_v14, 4 }
 0x307   : > { %v1034_v61 = vsel %vm814_vm11, %v1033_v9, %v2885_v21  ;;  %v1041_v23 = vsel %vm814_vm11, %v1040_v41, %v2886_v16  ;;  %v2373_v16 = vrot.slane %v4462_v6, 4  ;;  %v1747_v21 = vsel %vm337_vm4, 0.0, %v1746_v1 }
 0x308   : > { %2442 = vrot.lane.b32.xlu0 %v2372_v56, %s3095_s6  ;;  %1629 = vrot.lane.b32.xlu1 %v1547_v58, %s3094_s30  ;;  %v3032_v56 = vpack.i.bf16 %v1805_v5, %v2222_v37  ;;  %v2016_v58 = vsel %vm337_vm4, 0.0, %v2015_v43  ;;  %v1958_v45 = vsel %vm337_vm4, 0.0, %v1957_v25  ;;  %v2169_v41 = vrot.slane %v4497_v19, 4 }
 0x309   : > { %v3042_v10 = vpack.i.bf16 %v2166_v34, %v2016_v58  ;;  %v2374_v9 = vsel %vm337_vm4, 0.0, %v2373_v16  ;;  %v1960_v6 = vsel %vm337_vm4, 0.0, %v1959_v52  ;;  %v2860_v5 = vunpack.i.l.bf16 %v4348_v17 }
 0x30a   : > { %v4688_v22 = vpop.permute.xlu1 %2903  ;;  %v3052_v63 = vpack.i.bf16 %v1960_v6, %v1749_v7  ;;  %v2881_v19 = vunpack.i.h.bf16 %v4513_v3  ;;  %v2880_v43 = vunpack.i.l.bf16 %v4513_v3  ;;  %v2170_v37 = vsel %vm337_vm4, 0.0, %v2169_v41  ;;  %v5100_v7 = vld [vmem:[#allocation3_spill] sm:$0xff] }
 0x30b   : > { %2434 = vrot.lane.b32.xlu2 %v2370_v26, %s3098_s9  ;;  %v3037_v26 = vpack.i.bf16 %v1958_v45, %v1747_v21  ;;  %v1459_v17 = vsel %vm822_vm15, %v4549_v32, %v2860_v5  ;;  %v2020_v3 = vsel %vm337_vm4, 0.0, %v2019_v29  ;;  %v2890_v32 = vunpack.i.l.bf16 %v4558_v20 }
 0x30c   : > { %v4683_v42 = vpop.permute.xlu0 %2908  ;;  %v4722_v1 = vsel %vm824_vm1, %v1466_v49, %v2881_v19  ;;  %v3072_v25 = vpack.i.bf16 %v2170_v37, %v2020_v3  ;;  %v2430_v21 = vsel %vm337_vm4, 0.0, %v2429_v27  ;;  %v1752_v20 = vrot.slane %v4538_v59, 4  ;;  %v5101_v37 = vld [vmem:[#allocation9_spill] sm:$0xff]  ;;  %v5102_v49 = vld [vmem:[#allocation8_spill] sm:$0xff] }
 0x30d   : > { %v4695_v57 = vpop.permute.xlu2 %2943  ;;  %v2901_v19 = vunpack.i.h.bf16 %v4611_v40  ;;  %v2900_v59 = vunpack.i.l.bf16 %v4611_v40 }
 0x30e   : > { %v1753_v5 = vsel %vm337_vm4, 0.0, %v1752_v20  ;;  %v2930_v20 = vunpack.i.l.bf16 %v4673_v13 }
 0x310   : > { %3058 = vrot.lane.b32.xlu0 %v3057_v18, %s3096_s7  ;;  %3033 = vrot.lane.b32.xlu1 %v3032_v56, %s3095_s6  ;;  %v1750_v18 = vrot.slane %v4521_v8, 4  ;;  %v1961_v56 = vrot.slane %v4527_v62, 4  ;;  %v4725_v8 = vsel %vm824_vm1, %v1459_v17, %v2880_v43 }
 0x312   : > { %v1751_v44 = vsel %vm337_vm4, 0.0, %v1750_v18  ;;  %v1962_v45 = vsel %vm337_vm4, 0.0, %v1961_v56 }
 0x313   : > { %3043 = vrot.lane.b32.xlu2 %v3042_v10, %s3095_s6  ;;  %v3067_v41 = vpack.i.bf16 %v1962_v45, %v1751_v44  ;;  %v2896_v45 = vunpack.i.h.bf16 %v4659_v12 }
 0x314   : > { %v4709_v55 = vpop.permute.xlu0 %2923  ;;  %v2919_v34 = vpop.permute.xlu1 %2918 }
 0x315   : > { %v2921_v31 = vunpack.i.h.bf16 %v2919_v34  ;;  %v2920_v10 = vunpack.i.l.bf16 %v2919_v34 }
 0x316   : > { %v4727_v58 = vpop.permute.xlu2 %2953 }
 0x317   : > { %v1035_v62 = vsel %vm816_vm12, %v1034_v61, %v2920_v10  ;;  %v1042_v16 = vsel %vm816_vm12, %v1041_v23, %v2921_v31  ;;  %v1602_v61 = vrot.slane %v4544_v35, 4  ;;  %v2431_v10 = vrot.slane %v4395_v38, 4 }
 0x318   : > { %2450 = vrot.lane.b32.xlu0 %v2374_v9, %s3096_s7  ;;  %3038 = vrot.lane.b32.xlu1 %v3037_v26, %s3098_s9  ;;  %v1036_v51 = vsel %vm818_vm13, %v1035_v62, %v2890_v32  ;;  %v1043_v52 = vsel %vm818_vm13, %v1042_v16, %v2891_v53  ;;  %v1963_v9 = vrot.slane %v5100_v7, 4  ;;  %v2926_v16 = vunpack.i.h.bf16 %v4709_v55 }
 0x319   : > { %v1603_v43 = vsel %vm337_vm4, 0.0, %v1602_v61  ;;  %v2432_v0 = vsel %vm337_vm4, 0.0, %v2431_v10 }
 0x31a   : > { %v3077_v56 = vpack.i.bf16 %v1753_v5, %v1603_v43  ;;  %v2945_v43 = vunpack.i.l.bf16 %v4695_v57 }
 0x31b   : > { %3053 = vrot.lane.b32.xlu2 %v3052_v63, %s3095_s6  ;;  %v1964_v63 = vsel %vm337_vm4, 0.0, %v1963_v9  ;;  %v1044_v9 = vsel %vm820_vm14, %v1043_v52, %v2926_v16  ;;  %v2906_v52 = vunpack.i.h.bf16 %v4688_v22 }
 0x31c   : > { %v2939_v23 = vpop.permute.xlu0 %2938 }
 0x31d   : > { %v2934_v26 = vpop.permute.xlu1 %2933  ;;  %v2941_v35 = vunpack.i.h.bf16 %v2939_v23  ;;  %v2940_v18 = vunpack.i.l.bf16 %v2939_v23  ;;  %v1045_v23 = vsel %vm822_vm15, %v1044_v9, %v2896_v45 }
 0x31e   : > { %v4744_v29 = vpop.permute.xlu2 %2466  ;;  %v2936_v6 = vunpack.i.h.bf16 %v2934_v26  ;;  %v2935_v4 = vunpack.i.l.bf16 %v2934_v26 }
 0x320   : > { %3073 = vrot.lane.b32.xlu0 %v3072_v25, %s3094_s30  ;;  %2478 = vrot.lane.b32.xlu1 %v2430_v21, %s3096_s7  ;;  %v1246_v27 = vsel %vm812_vm10, %v5101_v37, %v2936_v6  ;;  %v1239_v17 = vsel %vm812_vm10, %v5102_v49, %v2935_v4  ;;  %v2925_v21 = vunpack.i.l.bf16 %v4709_v55  ;;  %v2910_v37 = vunpack.i.l.bf16 %v4683_v42 }
 0x321   : > { %v1247_v34 = vsel %vm814_vm11, %v1246_v27, %v2901_v19  ;;  %v1240_v40 = vsel %vm814_vm11, %v1239_v17, %v2900_v59  ;;  %v2905_v19 = vunpack.i.l.bf16 %v4688_v22  ;;  %v2946_v59 = vunpack.i.h.bf16 %v4695_v57 }
 0x322   : > { %v1248_v3 = vsel %vm816_vm12, %v1247_v34, %v2941_v35  ;;  %v1241_v31 = vsel %vm816_vm12, %v1240_v40, %v2940_v18  ;;  %v1037_v61 = vsel %vm820_vm14, %v1036_v51, %v2925_v21  ;;  %v2911_v18 = vunpack.i.h.bf16 %v4683_v42 }
 0x323   : > { %3068 = vrot.lane.b32.xlu2 %v3067_v41, %s3096_s7  ;;  %v2895_v41 = vunpack.i.l.bf16 %v4659_v12  ;;  %v1242_v27 = vsel %vm818_vm13, %v1241_v31, %v2905_v19  ;;  %v2512_v42 = vrot.slane %v4722_v1, 4 }
 0x324   : > { %v4768_v53 = vpop.permute.xlu0 %1625  ;;  %v1243_v22 = vsel %vm820_vm14, %v1242_v27, %v2945_v43 }
 0x325   : > { %v2949_v48 = vpop.permute.xlu1 %2948  ;;  %v1038_v26 = vsel %vm822_vm15, %v1037_v61, %v2895_v41  ;;  %v1244_v57 = vsel %vm822_vm15, %v1243_v22, %v2910_v37 }
 0x326   : > { %v1039_v6 = vsel %vm824_vm1, %v1038_v26, %v2930_v20  ;;  %v2950_v49 = vunpack.i.l.bf16 %v2949_v48 }
 0x327   : > { %v4766_v25 = vpop.permute.xlu2 %2474  ;;  %v2505_v12 = vrot.slane %v1039_v6, 4 }
 0x328   : > { %2046 = vrot.lane.b32.xlu0 %v1964_v63, %s3094_s30  ;;  %3063 = vrot.lane.b32.xlu1 %v3062_v36, %s3094_s30  ;;  %v2375_v36 = vrot.slane %v4581_v47, 4  ;;  %v2931_v47 = vunpack.i.h.bf16 %v4673_v13  ;;  %v1245_v10 = vsel %vm824_vm1, %v1244_v57, %v2950_v49  ;;  %v2955_v57 = vunpack.i.l.bf16 %v4727_v58 }
 0x329   : > { %v4805_v51 = vsel %vm241_vm0, %v4641_v30, %v2505_v12  ;;  %v2951_v30 = vunpack.i.h.bf16 %v2949_v48 }
 0x32a   : > { %v2376_v44 = vsel %vm337_vm4, 0.0, %v2375_v36  ;;  %v1046_v55 = vsel %vm824_vm1, %v1045_v23, %v2931_v47 }
 0x32b   : > { %3078 = vrot.lane.b32.xlu2 %v3077_v56, %s3094_s30  ;;  %v2506_v4 = vrot.slane %v1046_v55, 4 }
 0x32c   : > { %v4777_v62 = vpop.permute.xlu0 %2968 }
 0x32d   : > { %v4801_v13 = vsel %vm241_vm0, %v4638_v28, %v2506_v4  ;;  %v1249_v28 = vsel %vm818_vm13, %v1248_v3, %v2906_v52  ;;  %v2511_v3 = vrot.slane %v4725_v8, 4  ;;  %v2971_v12 = vunpack.i.h.bf16 %v4777_v62 }
 0x32e   : > { %v4779_v38 = vpop.permute.xlu1 %2958  ;;  %v1250_v17 = vsel %vm820_vm14, %v1249_v28, %v2946_v59  ;;  %v2970_v52 = vunpack.i.l.bf16 %v4777_v62 }
 0x32f   : > { %v1251_v34 = vsel %vm822_vm15, %v1250_v17, %v2911_v18  ;;  %v4833_v48 = vsel %vm241_vm0, %v1245_v10, %v2511_v3 }
 0x330   : > { %2486 = vrot.lane.b32.xlu1 %v2432_v0, %s3094_s30  ;;  %v1252_v31 = vsel %vm824_vm1, %v1251_v34, %v2951_v30 }
 0x331   : > { %v4830_v0 = vsel %vm241_vm0, %v1252_v31, %v2512_v42  ;;  %v2960_v31 = vunpack.i.l.bf16 %v4779_v38 }
 0x335   : > { %v4773_v32 = vpop.permute.xlu2 %2988 }
 0x338   : > { %2458 = vrot.lane.b32.xlu1 %v2376_v44, %s3094_s30 }
 0x33b   : > { %v4795_v5 = vpop.permute.xlu0 %2978 }
 0x33d   : > { %v4787_v7 = vpop.permute.xlu2 %2446  ;;  %v4797_v63 = vpop.permute.xlu1 %2963 }
 0x345   : > { %v4811_v35 = vpop.permute.xlu2 %2998 }
 0x349   : > { %v4821_v40 = vpop.permute.xlu0 %2482  ;;  %v4823_v56 = vpop.permute.xlu1 %2973 }
 0x34d   : > { %v4835_v36 = vpop.permute.xlu2 %3003 }
 0x352   : > { %v4837_v44 = vpop.permute.xlu0 %3013  ;;  %v2439_v16 = vpop.permute.xlu1 %2438 }
 0x353   : > { %v3015_v42 = vunpack.i.l.bf16 %v4837_v44 }
 0x355   : > { %v4839_v21 = vpop.permute.xlu2 %3018 }
 0x35a   : > { %v3024_v1 = vpop.permute.xlu0 %3023  ;;  %v2984_v45 = vpop.permute.xlu1 %2983 }
 0x35b   : > { %v2986_v59 = vunpack.i.h.bf16 %v2984_v45  ;;  %v2985_v28 = vunpack.i.l.bf16 %v2984_v45 }
 0x35d   : > { %v2463_v8 = vpop.permute.xlu2 %2462 }
 0x35e   : > { %v2496_v55 = vsel %vm812_vm10, %v4603_v11, %v2463_v8 }
 0x35f   : > { %v2497_v37 = vsel %vm814_vm11, %v2496_v55, %v4744_v29 }
 0x362   : > { %v3029_v41 = vpop.permute.xlu0 %3028  ;;  %v4841_v47 = vpop.permute.xlu1 %2993 }
 0x363   : > { %v3031_v9 = vunpack.i.h.bf16 %v3029_v41  ;;  %v3030_v61 = vunpack.i.l.bf16 %v3029_v41 }
 0x365   : > { %v2435_v20 = vpop.permute.xlu2 %2434  ;;  %v2283_v6 = vsel %vm812_vm10, %v4480_v39, %v3031_v9  ;;  %v2084_v4 = vsel %vm812_vm10, %v4488_v60, %v3030_v61 }
 0x366   : > { %v2085_v11 = vsel %vm814_vm11, %v2084_v4, %v2970_v52  ;;  %v2284_v27 = vsel %vm814_vm11, %v2283_v6, %v2971_v12  ;;  %v2489_v10 = vsel %vm812_vm10, %v4633_v33, %v2435_v20  ;;  %v3026_v20 = vunpack.i.h.bf16 %v3024_v1 }
 0x367   : > { %v2490_v9 = vsel %vm814_vm11, %v2489_v10, %v2439_v16  ;;  %v3025_v6 = vunpack.i.l.bf16 %v3024_v1  ;;  %v2956_v12 = vunpack.i.h.bf16 %v4727_v58  ;;  %v2965_v1 = vunpack.i.l.bf16 %v4797_v63 }
 0x368   : > { %v1873_v16 = vsel %vm812_vm10, %v4435_v15, %v3026_v20  ;;  %v2976_v58 = vunpack.i.h.bf16 %v4823_v56  ;;  %v2975_v15 = vunpack.i.l.bf16 %v4823_v56  ;;  %v2990_v56 = vunpack.i.l.bf16 %v4773_v32 }
 0x369   : > { %v2290_v52 = vsel %vm812_vm10, %v4450_v46, %v3025_v6  ;;  %v2980_v20 = vunpack.i.l.bf16 %v4795_v5  ;;  %v3020_v6 = vunpack.i.l.bf16 %v4839_v21 }
 0x36a   : > { %v2471_v23 = vpop.permute.xlu0 %2470  ;;  %v4843_v26 = vpop.permute.xlu1 %2454 }
 0x36b   : > { %v2498_v39 = vsel %vm816_vm12, %v2497_v37, %v2471_v23 }
 0x36c   : > { %v4866_v29 = vsel %vm818_vm13, %v2498_v39, %v4766_v25 }
 0x36d   : > { %v3044_v19 = vpop.permute.xlu2 %3043 }
 0x36e   : > { %v3046_v43 = vunpack.i.h.bf16 %v3044_v19  ;;  %v3045_v18 = vunpack.i.l.bf16 %v3044_v19 }
 0x370   : > { %v2285_v60 = vsel %vm816_vm12, %v2284_v27, %v3046_v43  ;;  %v2086_v30 = vsel %vm816_vm12, %v2085_v11, %v3045_v18  ;;  %v2966_v43 = vunpack.i.h.bf16 %v4797_v63 }
 0x371   : > { %v4861_v62 = vsel %vm818_vm13, %v2086_v30, %v2985_v28  ;;  %v2286_v17 = vsel %vm818_vm13, %v2285_v60, %v2986_v59 }
 0x372   : > { %v3049_v49 = vpop.permute.xlu0 %3048  ;;  %v3009_v22 = vpop.permute.xlu1 %3008  ;;  %v1874_v39 = vsel %vm814_vm11, %v1873_v16, %v2966_v43 }
 0x373   : > { %v3010_v34 = vunpack.i.l.bf16 %v3009_v22  ;;  %v3011_v23 = vunpack.i.h.bf16 %v3009_v22  ;;  %v3051_v46 = vunpack.i.h.bf16 %v3049_v49  ;;  %v3050_v60 = vunpack.i.l.bf16 %v3049_v49 }
 0x374   : > { %v2991_v22 = vunpack.i.h.bf16 %v4773_v32  ;;  %v3001_v32 = vunpack.i.h.bf16 %v4811_v35 }
 0x375   : > { %v1660_v3 = vsel %vm812_vm10, %v4570_v50, %v3010_v34  ;;  %v4881_v61 = vpop.permute.xlu2 %3053  ;;  %v1667_v4 = vsel %vm812_vm10, %v4573_v54, %v3011_v23  ;;  %v3016_v54 = vunpack.i.h.bf16 %v4837_v44 }
 0x376   : > { %v1661_v45 = vsel %vm814_vm11, %v1660_v3, %v2955_v57  ;;  %v1668_v19 = vsel %vm814_vm11, %v1667_v4, %v2956_v12  ;;  %v3056_v12 = vunpack.i.h.bf16 %v4881_v61  ;;  %v3055_v16 = vunpack.i.l.bf16 %v4881_v61 }
 0x377   : > { %v1662_v8 = vsel %vm816_vm12, %v1661_v45, %v3015_v42  ;;  %v1669_v11 = vsel %vm816_vm12, %v1668_v19, %v3016_v54  ;;  %v2996_v19 = vunpack.i.h.bf16 %v4841_v47 }
 0x378   : > { %v4878_v25 = vsel %vm818_vm13, %v1662_v8, %v2960_v31 }
 0x37a   : > { %v2443_v41 = vpop.permute.xlu0 %2442  ;;  %v4884_v55 = vpop.permute.xlu1 %1629 }
 0x37b   : > { %v2491_v50 = vsel %vm816_vm12, %v2490_v9, %v2443_v41 }
 0x37c   : > { %v4888_v33 = vsel %vm818_vm13, %v2491_v50, %v4787_v7  ;;  %v2961_v7 = vunpack.i.h.bf16 %v4779_v38  ;;  %v2291_v38 = vsel %vm814_vm11, %v2290_v52, %v2965_v1  ;;  %v2981_v50 = vunpack.i.h.bf16 %v4795_v5 }
 0x37d   : > { %v3069_v27 = vpop.permute.xlu2 %3068 }
 0x37e   : > { %v1670_v3 = vsel %vm818_vm13, %v1669_v11, %v2961_v7  ;;  %v2995_v7 = vunpack.i.l.bf16 %v4841_v47  ;;  %v3070_v54 = vunpack.i.l.bf16 %v3069_v27 }
 0x382   : > { %v4898_v59 = vpop.permute.xlu0 %3058  ;;  %v3034_v18 = vpop.permute.xlu1 %3033 }
 0x383   : > { %v3036_v37 = vunpack.i.h.bf16 %v3034_v18  ;;  %v3035_v28 = vunpack.i.l.bf16 %v3034_v18  ;;  %v3061_v63 = vunpack.i.h.bf16 %v4898_v59  ;;  %v1664_v18 = vsel %vm820_vm14, %v4878_v25, %v3020_v6 }
 0x384   : > { %v3005_v6 = vunpack.i.l.bf16 %v4835_v36 }
 0x385   : > { %v1875_v44 = vsel %vm816_vm12, %v1874_v39, %v3036_v37  ;;  %v2292_v30 = vsel %vm816_vm12, %v2291_v38, %v3035_v28  ;;  %v2287_v45 = vsel %vm820_vm14, %v2286_v17, %v3061_v63  ;;  %v3079_v43 = vpop.permute.xlu2 %3078 }
 0x386   : > { %v1876_v34 = vsel %vm818_vm13, %v1875_v44, %v2976_v58  ;;  %v2293_v57 = vsel %vm818_vm13, %v2292_v30, %v2975_v15  ;;  %v2288_v4 = vsel %vm822_vm15, %v2287_v45, %v3001_v32  ;;  %v3006_v58 = vunpack.i.h.bf16 %v4835_v36  ;;  %v2536_v30 = vld [vmem:[%s5011_s4] sm:$0xf] }
 0x387   : > { %v2294_v42 = vsel %vm820_vm14, %v2293_v57, %v3050_v60  ;;  %v1877_v49 = vsel %vm820_vm14, %v1876_v34, %v3051_v46  ;;  %v3081_v47 = vunpack.i.h.bf16 %v3079_v43  ;;  %v1665_v46 = vsel %vm822_vm15, %v1664_v18, %v4768_v53  ;;  %2539 = vperm.xlu1 %3082, %v2536_v30   ;;  %v2600_v18 = vld.sshfl [vmem:[#allocation1 + $0x8] sm:$0xff pattern:$0x75316420] }
 0x388   : > { %v2295_v31 = vsel %vm822_vm15, %v2294_v42, %v2990_v56  ;;  %v1878_v10 = vsel %vm822_vm15, %v1877_v49, %v2991_v22  ;;  %v3071_v60 = vunpack.i.h.bf16 %v3069_v27  ;;  %v1666_v44 = vsel %vm824_vm1, %v1665_v46, %v4884_v55 }
 0x389   : > { %v3060_v22 = vunpack.i.l.bf16 %v4898_v59  ;;  %v3021_v57 = vunpack.i.h.bf16 %v4839_v21  ;;  %v3080_v49 = vunpack.i.l.bf16 %v3079_v43  ;;  %v3000_v21 = vunpack.i.l.bf16 %v4811_v35 }
 0x38a   : > { %v4922_v8 = vpop.permute.xlu0 %2450  ;;  %v3039_v41 = vpop.permute.xlu1 %3038 }
 0x38b   : > { %v3041_v9 = vunpack.i.h.bf16 %v3039_v41  ;;  %v3040_v23 = vunpack.i.l.bf16 %v3039_v41  ;;  %v2088_v45 = vsel %vm820_vm14, %v4861_v62, %v3060_v22  ;;  %v1671_v41 = vsel %vm820_vm14, %v1670_v3, %v3021_v57 }
 0x38c   : > { %v2089_v62 = vsel %vm822_vm15, %v2088_v45, %v3000_v21 }
 0x38d   : > { %v2077_v17 = vsel %vm812_vm10, %v4678_v14, %v3041_v9  ;;  %v1866_v52 = vsel %vm812_vm10, %v4669_v2, %v3040_v23 }
 0x38e   : > { %v2078_v5 = vsel %vm814_vm11, %v2077_v17, %v2981_v50  ;;  %v1867_v1 = vsel %vm814_vm11, %v1866_v52, %v2980_v20 }
 0x38f   : > { %v1868_v61 = vsel %vm816_vm12, %v1867_v1, %v3055_v16  ;;  %v2079_v14 = vsel %vm816_vm12, %v2078_v5, %v3056_v12  ;;  %v1672_v16 = vsel %vm822_vm15, %v1671_v41, %v3005_v6 }
 0x390   : > { %v2080_v2 = vsel %vm818_vm13, %v2079_v14, %v2996_v19  ;;  %v1869_v15 = vsel %vm818_vm13, %v1868_v61, %v2995_v7  ;;  %v1673_v19 = vsel %vm824_vm1, %v1672_v16, %v3080_v49 }
 0x391   : > { %v1870_v28 = vsel %vm820_vm14, %v1869_v15, %v3070_v54  ;;  %v2081_v56 = vsel %vm820_vm14, %v2080_v2, %v3071_v60  ;;  %v2599_v2 = vld.sshfl [vmem:[#allocation1] sm:$0xff pattern:$0x75316420] }
 0x392   : > { %v3074_v37 = vpop.permute.xlu0 %3073  ;;  %v2479_v39 = vpop.permute.xlu1 %2478  ;;  %v1871_v25 = vsel %vm822_vm15, %v1870_v28, %v3006_v58  ;;  %v2082_v42 = vsel %vm822_vm15, %v2081_v56, %v4499_v24 }
 0x393   : > { %v3076_v11 = vunpack.i.h.bf16 %v3074_v37  ;;  %v1872_v38 = vsel %vm824_vm1, %v1871_v25, %v3081_v47  ;;  %v3075_v9 = vunpack.i.l.bf16 %v3074_v37  ;;  %v2500_v3 = vsel %vm820_vm14, %v4866_v29, %v2479_v39 }
 0x394   : > { %v2517_v63 = vrot.slane %v1872_v38, 4  ;;  %v2493_v29 = vsel %vm820_vm14, %v4888_v33, %v4922_v8 }
 0x395   : > { %v2289_v53 = vsel %vm824_vm1, %v2288_v4, %v3076_v11  ;;  %v2090_v52 = vsel %vm824_vm1, %v2089_v62, %v3075_v9  ;;  %v2494_v5 = vsel %vm822_vm15, %v2493_v29, %v4843_v26 }
 0x396   : > { %v2531_v34 = vsel %vm241_vm0, %v1666_v44, %v2517_v63  ;;  %v2523_v55 = vrot.slane %v2289_v53, 4 }
 0x39a   : > { %v2047_v27 = vpop.permute.xlu0 %2046  ;;  %v3064_v32 = vpop.permute.xlu1 %3063 }
 0x39b   : > { %v2083_v59 = vsel %vm824_vm1, %v2082_v42, %v2047_v27  ;;  %v3066_v23 = vunpack.i.h.bf16 %v3064_v32  ;;  %v3065_v50 = vunpack.i.l.bf16 %v3064_v32 }
 0x39c   : > { %v2533_v20 = vsel %vm241_vm0, %v2083_v59, %v2523_v55 }
 0x39d   : > { %v2296_v24 = vsel %vm824_vm1, %v2295_v31, %v3065_v50  ;;  %v1879_v4 = vsel %vm824_vm1, %v1878_v10, %v3066_v23  ;;  %v2501_v10 = vsel %vm822_vm15, %v2500_v3, %v4821_v40  ;;  %v2535_v40 = vld [vmem:[%s5010_s3] sm:$0xf] }
 0x39e   : > { %v2524_v12 = vrot.slane %v2296_v24, 4  ;;  %v2518_v17 = vrot.slane %v1879_v4, 4 }
 0x3a0   : > { %v2534_v35 = vsel %vm241_vm0, %v2090_v52, %v2524_v12  ;;  %v2532_v36 = vsel %vm241_vm0, %v1673_v19, %v2518_v17 }
 0x3a2   : > { %v2487_v31 = vpop.permute.xlu1 %2486 }
 0x3a3   : > { %v2502_v7 = vsel %vm824_vm1, %v2501_v10, %v2487_v31 }
 0x3a4   : > { %2683 = vmatpush.msk.msra.mxu3 %vm241_vm0, %v2502_v7 }
 0x3a6   : > { %2584 = vmatpush.msra.mxu3 %v2534_v35 }
 0x3a8   : > { %2585 = vmatpush.msra.mxu3 %v2532_v36 }
 0x3aa   : > { %v2459_v43 = vpop.permute.xlu1 %2458  ;;  %2586 = vmatpush.msra.mxu3 %v4830_v0 }
 0x3ab   : > { %v2495_v1 = vsel %vm824_vm1, %v2494_v5, %v2459_v43 }
 0x3ac   : > { %2681 = vmatpush.msk.msra.mxu2 %vm241_vm0, %v2495_v1  ;;  %2587 = vmatpush.msra.mxu3 %v4801_v13 }
 0x3ad   : > { %2684 = vmatmul.msk.f32.vlgmr.msra.gmra.mxu3 %vm2542_vm2, %v2535_v40 }
 0x3ae   : > { %2564 = vmatpush.msra.mxu2 %v2533_v20 }
 0x3b0   : > { %2565 = vmatpush.msra.mxu2 %v2531_v34 }
 0x3b2   : > { %2566 = vmatpush.msra.mxu2 %v4833_v48 }
 0x3b4   : > { %2567 = vmatpush.msra.mxu2 %v4805_v51 }
 0x3b5   : > { %2682 = vmatmul.msk.f32.vlgmr.msra.gmra.mxu2 %vm2542_vm2, %v2535_v40 }
 0x3f9   : > { %v2540_v0 = vpop.permute.xlu1 %2539 }
 0x430   : > { %v2589_v26 = vpop.f32.mrf.mxu3 }
 0x431   : > { %v2590_v33 = vadd.f32 %v2589_v26, %v2540_v0 }
 0x433   : > { %vm2593_vm3 = vcmp.gt.f32.partialorder %v2590_v33, 0.0  ;;  %v2595_v8 = vmul.f32 0.2, %v2590_v33 }
 0x435   : > { %v2597_v54 = vsel %vm2593_vm3, %v2590_v33, %v2595_v8 }
 0x436   : > { %v2604_v61 = vadd.f32 %v2600_v18, %v2597_v54 }
 0x438   : > { %v2569_v14 = vpop.f32.mrf.mxu2  ;;  %v2606_v15 = vmax.f32 %v2604_v61, 0.0 }
 0x439   : > { %v2570_v58 = vadd.f32 %v2569_v14, %v2540_v0 }
 0x43a   : > { %v2609_v37 = vrot.slane %v2606_v15, 4 }
 0x43b   : > { %vm2592_vm4 = vcmp.gt.f32.partialorder %v2570_v58, 0.0  ;;  %v2594_v13 = vmul.f32 0.2, %v2570_v58 }
 0x43d   : > { %v2596_v47 = vsel %vm2592_vm4, %v2570_v58, %v2594_v13 }
 0x43e   : > { %v2603_v48 = vadd.f32 %v2599_v2, %v2596_v47 }
 0x440   : > { %v2605_v51 = vmax.f32 %v2603_v48, 0.0 }
 0x442   : > { %v2610_v28 = vsel %vm241_vm0, %v2605_v51, %v2609_v37 }
 0x443   : > { %2612 = vst [vmem:[%s224_s23] sm:$0xff] %v2610_v28 }
 0x444 PF: > { %s15_s18 = sadd.s32 1, %s3089_s18  }
 0x445   : > { %p12_p4 = scmp.ge.s32.totalorder %s15_s18, 4  }
 0x447   :  { %14 = sbr.rel (!%p12_p4) target bundleno = 1 (0x1), region = 70 }

</bundles_post_ra>
